<compile_context>
chip_gen: v7x
topology: tpu7x:2x2x1
jax: 0.10.0
libtpu: 0.0.40
codegen_flags: <defaults>
</compile_context>

<pallas_src>
import functools

import jax
import jax.numpy as jnp
from jax.experimental import pallas as pl
from jax.experimental.pallas import tpu as pltpu


def embed_proj_highway_kernel(emb_ref, wf_ref, b1_ref, w2_ref, b2_ref, o_ref,
                              *, hidden):
    """One token tile: fused projection + 2 highway layers (2 MXU dots).

    emb_ref: (T, E)   gathered word embeddings for this token tile (bf16)
    wf_ref:  (E, 3H)  [Wp^T | Wp^T @ Wg1^T | Wp^T @ Wt1^T]          (bf16)
    b1_ref:  (1, 2H)  [gate1 bias | transform1 bias]                 (f32)
    w2_ref:  (H, 2H)  [Wg2^T | Wt2^T]                                (bf16)
    b2_ref:  (1, 2H)  [gate2 bias | transform2 bias]                 (f32)
    o_ref:   (T, H)
    """
    # Dot 1: projection + highway-layer-1 pre-activations in one MXU pass.
    hg = jnp.dot(emb_ref[...], wf_ref[...],
                 preferred_element_type=jnp.float32)          # (T, 3H) f32
    h = hg[:, :hidden]                                         # projected x
    gt = hg[:, hidden:] + b1_ref[...]                          # (T, 2H)
    g = jax.nn.sigmoid(gt[:, :hidden])                         # gate (EUP)
    t = jnp.maximum(gt[:, hidden:], 0.0)                       # relu (VPU)
    h = h + g * (t - h)                                        # highway blend

    # Dot 2: highway layer 2 (gate | transform fused along lanes).
    gt = jnp.dot(h.astype(w2_ref.dtype), w2_ref[...],
                 preferred_element_type=jnp.float32) + b2_ref[...]   # (T, 2H)
    g = jax.nn.sigmoid(gt[:, :hidden])
    t = jnp.maximum(gt[:, hidden:], 0.0)
    h = h + g * (t - h)

    o_ref[...] = h.astype(o_ref.dtype)


def dropout_embedding_forward(word_ids, word_vectors, proj_w,
                              gate_w, gate_b, trans_w, trans_b,
                              *, token_tile=512, use_bf16=True):
    """Eval-mode forward of Dropout_Embedding_Try2.

    word_ids:       (B, S) int32 token indices
    word_vectors:   (V, E) pre-trained embedding table
    proj_w:         (H, E) torch Linear weight (out, in), bias=False
    gate_w/trans_w: (2, H, H) torch Linear weights, one per highway layer
    gate_b/trans_b: (2, H)    torch Linear biases
    """
    b, s = word_ids.shape
    _, e = word_vectors.shape
    h = proj_w.shape[0]

    n_tok = b * s
    n_tiles = pl.cdiv(n_tok, token_tile)
    pad = n_tiles * token_tile - n_tok

    # Pad the cheap int32 ids (4 B/token) BEFORE the gather, not the (N, E)
    # embedding activation — avoids an extra HBM round trip on the big tensor.
    ids = word_ids.reshape(-1)
    if pad:
        ids = jnp.pad(ids, (0, pad))
    emb = jnp.take(word_vectors, ids, axis=0)                   # (N_pad, E)

    # Weight glue in f32, then cast MXU operands to bf16.
    wp = proj_w.T.astype(jnp.float32)                            # (E, H)
    w1 = jnp.concatenate([gate_w[0].T, trans_w[0].T], axis=1)    # (H, 2H)
    w2 = jnp.concatenate([gate_w[1].T, trans_w[1].T], axis=1)    # (H, 2H)
    # Fuse projection with layer-1's dot:  x @ [Wp^T | Wp^T@W1] -> [h|g1|t1].
    wf = jnp.concatenate([wp, wp @ w1.astype(jnp.float32)], axis=1)   # (E, 3H)
    b1 = jnp.concatenate([gate_b[0], trans_b[0]]).reshape(1, 2 * h).astype(jnp.float32)
    b2 = jnp.concatenate([gate_b[1], trans_b[1]]).reshape(1, 2 * h).astype(jnp.float32)

    mx_dtype = jnp.bfloat16 if use_bf16 else word_vectors.dtype
    emb = emb.astype(mx_dtype)
    wf = wf.astype(mx_dtype)
    w2 = w2.astype(mx_dtype)

    kernel = functools.partial(embed_proj_highway_kernel, hidden=h)
    out = pl.pallas_call(
        kernel,
        out_shape=jax.ShapeDtypeStruct((n_tiles * token_tile, h), word_vectors.dtype),
        grid=(n_tiles,),
        in_specs=[
            pl.BlockSpec((token_tile, e), lambda i: (i, 0)),
            pl.BlockSpec((e, 3 * h), lambda i: (0, 0)),
            pl.BlockSpec((1, 2 * h), lambda i: (0, 0)),
            pl.BlockSpec((h, 2 * h), lambda i: (0, 0)),
            pl.BlockSpec((1, 2 * h), lambda i: (0, 0)),
        ],
        out_specs=pl.BlockSpec((token_tile, h), lambda i: (i, 0)),
        compiler_params=pltpu.CompilerParams(
            dimension_semantics=("parallel",),
            vmem_limit_bytes=32 << 20,   # safe on v5e/v6e/v7x; tiles are ~1 MiB
        ),
    )(emb, wf, b1, w2, b2)

    return out[:n_tok].reshape(b, s, h)


def dropout_embedding_reference(word_ids, word_vectors, proj_w,
                                gate_w, gate_b, trans_w, trans_b):
    """Pure-JAX f32 reference matching the torch module in eval mode."""
    emb = word_vectors[word_ids]                     # (B, S, E)
    x = emb @ proj_w.T                               # (B, S, H)
    for layer in range(2):
        g = jax.nn.sigmoid(x @ gate_w[layer].T + gate_b[layer])
        t = jnp.maximum(x @ trans_w[layer].T + trans_b[layer], 0.0)
        x = g * t + (1.0 - g) * x
    return x


if __name__ == "__main__":
    # Small shapes consistent with the module; 800 tokens -> 4 tiles of 256
    # (exercises padding, the parallel grid, and multi-core sharding on v7x).
    vocab = 256          # V (pre-trained vocabulary size)
    embed_dim = 128      # E (word-vector width)
    hidden = 128         # H (hidden_size)
    batch = 4            # B
    seq = 200            # S  -> 800 tokens -> pads to 1024 -> 4 token tiles

    key = jax.random.PRNGKey(0)
    k_ids, k_wv, k_p, k_gw, k_gb, k_tw, k_tb = jax.random.split(key, 7)

    word_vectors = jax.random.normal(k_wv, (vocab, embed_dim), dtype=jnp.float32) * 0.5
    word_ids = jax.random.randint(k_ids, (batch, seq), 0, vocab, dtype=jnp.int32)

    # Deterministic Linear-style uniform init.
    bound_p = 1.0 / (embed_dim ** 0.5)
    proj_w = jax.random.uniform(k_p, (hidden, embed_dim),
                                minval=-bound_p, maxval=bound_p, dtype=jnp.float32)
    bound_h = 1.0 / (hidden ** 0.5)
    gate_w = jax.random.uniform(k_gw, (2, hidden, hidden),
                                minval=-bound_h, maxval=bound_h, dtype=jnp.float32)
    gate_b = jax.random.uniform(k_gb, (2, hidden),
                                minval=-bound_h, maxval=bound_h, dtype=jnp.float32)
    trans_w = jax.random.uniform(k_tw, (2, hidden, hidden),
                                 minval=-bound_h, maxval=bound_h, dtype=jnp.float32)
    trans_b = jax.random.uniform(k_tb, (2, hidden),
                                 minval=-bound_h, maxval=bound_h, dtype=jnp.float32)

    out = dropout_embedding_forward(word_ids, word_vectors, proj_w,
                                    gate_w, gate_b, trans_w, trans_b,
                                    token_tile=256)
    out = jax.block_until_ready(out)

    ref = dropout_embedding_reference(word_ids, word_vectors, proj_w,
                                      gate_w, gate_b, trans_w, trans_b)
    assert out.shape == (batch, seq, hidden), out.shape
    # bf16 MXU operands with f32 accumulation: tolerance widened accordingly.
    assert jnp.allclose(out, ref, atol=2e-2, rtol=2e-2), (
        "mismatch vs reference: max abs diff "
        f"{float(jnp.max(jnp.abs(out - ref)))}")

    print("KERNEL_OK")
</pallas_src>

<mosaic_0001>
module attributes {stable_mosaic.version = 11 : i64} {
  func.func @embed_proj_highway_kernel(%arg0: i32, %arg1: memref<256x128xbf16, #tpu.memory_space<vmem>>, %arg2: memref<128x384xbf16, #tpu.memory_space<vmem>>, %arg3: memref<1x256xf32, #tpu.memory_space<vmem>>, %arg4: memref<128x256xbf16, #tpu.memory_space<vmem>>, %arg5: memref<1x256xf32, #tpu.memory_space<vmem>>, %arg6: memref<256x128xf32, #tpu.memory_space<vmem>>) attributes {dimension_semantics = [#tpu.dimension_semantics<parallel>], iteration_bounds = array<i64: 4>, scalar_prefetch = 0 : i64, scratch_operands = 0 : i64, tpu.core_type = #tpu.core_type<tc>, window_params = [{transform_indices = @transform_0, window_bounds = array<i64: 256, 128>}, {pipeline_mode = #tpu.pipeline_mode<synchronous>, transform_indices = @transform_1, window_bounds = array<i64: 128, 384>}, {pipeline_mode = #tpu.pipeline_mode<synchronous>, transform_indices = @transform_2, window_bounds = array<i64: 1, 256>}, {pipeline_mode = #tpu.pipeline_mode<synchronous>, transform_indices = @transform_3, window_bounds = array<i64: 128, 256>}, {pipeline_mode = #tpu.pipeline_mode<synchronous>, transform_indices = @transform_4, window_bounds = array<i64: 1, 256>}, {transform_indices = @transform_5, window_bounds = array<i64: 256, 128>}]} {
    %c0 = arith.constant 0 : index
    %c0_0 = arith.constant 0 : index
    %0 = vector.load %arg1[%c0, %c0_0] : memref<256x128xbf16, #tpu.memory_space<vmem>>, vector<256x128xbf16>
    %c0_1 = arith.constant 0 : index
    %c0_2 = arith.constant 0 : index
    %1 = vector.load %arg2[%c0_1, %c0_2] : memref<128x384xbf16, #tpu.memory_space<vmem>>, vector<128x384xbf16>
    %cst = arith.constant dense<0.000000e+00> : vector<256x384xf32>
    %2 = tpu.matmul %0, %1, %cst {dimension_numbers = #tpu.dot_dimension_numbers<[1], [0], [0], [1], [0, 0, 1, 1], [], []>} : vector<256x128xbf16>, vector<128x384xbf16>, vector<256x384xf32> -> vector<256x384xf32>
    %3 = vector.extract_strided_slice %2 {offsets = [0, 0], sizes = [256, 128], strides = [1, 1]} : vector<256x384xf32> to vector<256x128xf32>
    %4 = vector.extract_strided_slice %2 {offsets = [0, 128], sizes = [256, 256], strides = [1, 1]} : vector<256x384xf32> to vector<256x256xf32>
    %c0_3 = arith.constant 0 : index
    %c0_4 = arith.constant 0 : index
    %5 = vector.load %arg3[%c0_3, %c0_4] : memref<1x256xf32, #tpu.memory_space<vmem>>, vector<1x256xf32>
    %6 = vector.broadcast %5 : vector<1x256xf32> to vector<256x256xf32>
    %7 = arith.addf %4, %6 : vector<256x256xf32>
    %8 = vector.extract_strided_slice %7 {offsets = [0, 0], sizes = [256, 128], strides = [1, 1]} : vector<256x256xf32> to vector<256x128xf32>
    %9 = arith.negf %8 : vector<256x128xf32>
    %10 = math.exp %9 : vector<256x128xf32>
    %cst_5 = arith.constant 1.000000e+00 : f32
    %11 = vector.broadcast %cst_5 : f32 to vector<256x128xf32>
    %12 = arith.addf %11, %10 : vector<256x128xf32>
    %13 = arith.divf %11, %12 : vector<256x128xf32>
    %14 = vector.extract_strided_slice %7 {offsets = [0, 128], sizes = [256, 128], strides = [1, 1]} : vector<256x256xf32> to vector<256x128xf32>
    %cst_6 = arith.constant 0.000000e+00 : f32
    %15 = vector.broadcast %cst_6 : f32 to vector<256x128xf32>
    %16 = arith.maximumf %14, %15 : vector<256x128xf32>
    %17 = arith.subf %16, %3 : vector<256x128xf32>
    %18 = arith.mulf %13, %17 : vector<256x128xf32>
    %19 = arith.addf %3, %18 : vector<256x128xf32>
    %20 = arith.truncf %19 : vector<256x128xf32> to vector<256x128xbf16>
    %c0_7 = arith.constant 0 : index
    %c0_8 = arith.constant 0 : index
    %21 = vector.load %arg4[%c0_7, %c0_8] : memref<128x256xbf16, #tpu.memory_space<vmem>>, vector<128x256xbf16>
    %cst_9 = arith.constant dense<0.000000e+00> : vector<256x256xf32>
    %22 = tpu.matmul %20, %21, %cst_9 {dimension_numbers = #tpu.dot_dimension_numbers<[1], [0], [0], [1], [0, 0, 1, 1], [], []>} : vector<256x128xbf16>, vector<128x256xbf16>, vector<256x256xf32> -> vector<256x256xf32>
    %c0_10 = arith.constant 0 : index
    %c0_11 = arith.constant 0 : index
    %23 = vector.load %arg5[%c0_10, %c0_11] : memref<1x256xf32, #tpu.memory_space<vmem>>, vector<1x256xf32>
    %24 = vector.broadcast %23 : vector<1x256xf32> to vector<256x256xf32>
    %25 = arith.addf %22, %24 : vector<256x256xf32>
    %26 = vector.extract_strided_slice %25 {offsets = [0, 0], sizes = [256, 128], strides = [1, 1]} : vector<256x256xf32> to vector<256x128xf32>
    %27 = arith.negf %26 : vector<256x128xf32>
    %28 = math.exp %27 : vector<256x128xf32>
    %cst_12 = arith.constant 1.000000e+00 : f32
    %29 = vector.broadcast %cst_12 : f32 to vector<256x128xf32>
    %30 = arith.addf %29, %28 : vector<256x128xf32>
    %31 = arith.divf %29, %30 : vector<256x128xf32>
    %32 = vector.extract_strided_slice %25 {offsets = [0, 128], sizes = [256, 128], strides = [1, 1]} : vector<256x256xf32> to vector<256x128xf32>
    %cst_13 = arith.constant 0.000000e+00 : f32
    %33 = vector.broadcast %cst_13 : f32 to vector<256x128xf32>
    %34 = arith.maximumf %32, %33 : vector<256x128xf32>
    %35 = arith.subf %34, %19 : vector<256x128xf32>
    %36 = arith.mulf %31, %35 : vector<256x128xf32>
    %37 = arith.addf %19, %36 : vector<256x128xf32>
    %c0_14 = arith.constant 0 : index
    %c0_15 = arith.constant 0 : index
    %38 = vector.load %arg6[%c0_14, %c0_15] : memref<256x128xf32, #tpu.memory_space<vmem>>, vector<256x128xf32>
    tpu.vector_store %arg6[%c0_14, %c0_15], %37 {strides = array<i32>} : memref<256x128xf32, #tpu.memory_space<vmem>>, vector<256x128xf32>,
    return
  }
  func.func @transform_0(%arg0: i32) -> (i32, i32) {
    %c0_i32 = arith.constant 0 : i32
    %c0_i32_0 = arith.constant 0 : i32
    return %arg0, %c0_i32 : i32, i32
  }
  func.func @transform_1(%arg0: i32) -> (i32, i32) {
    %c0_i32 = arith.constant 0 : i32
    %c0_i32_0 = arith.constant 0 : i32
    %c0_i32_1 = arith.constant 0 : i32
    return %c0_i32, %c0_i32_0 : i32, i32
  }
  func.func @transform_2(%arg0: i32) -> (i32, i32) {
    %c0_i32 = arith.constant 0 : i32
    %c0_i32_0 = arith.constant 0 : i32
    %c0_i32_1 = arith.constant 0 : i32
    return %c0_i32, %c0_i32_0 : i32, i32
  }
  func.func @transform_3(%arg0: i32) -> (i32, i32) {
    %c0_i32 = arith.constant 0 : i32
    %c0_i32_0 = arith.constant 0 : i32
    %c0_i32_1 = arith.constant 0 : i32
    return %c0_i32, %c0_i32_0 : i32, i32
  }
  func.func @transform_4(%arg0: i32) -> (i32, i32) {
    %c0_i32 = arith.constant 0 : i32
    %c0_i32_0 = arith.constant 0 : i32
    %c0_i32_1 = arith.constant 0 : i32
    return %c0_i32, %c0_i32_0 : i32, i32
  }
  func.func @transform_5(%arg0: i32) -> (i32, i32) {
    %c0_i32 = arith.constant 0 : i32
    %c0_i32_0 = arith.constant 0 : i32
    return %arg0, %c0_i32 : i32, i32
  }
}

</mosaic_0001>

<bundles_post_ra>
// kernel: tpu_custom_call.1
= control target key start
LH: loop header
LB: loop body
LE: loop exit
PB: predicated region body
PF: predicated region fallthrough
CT: control target
= control target key end

     0   :  { %10 = vsyncpa [#allocation3], 0  ;;  %s3914_s0 = inlined_call_operand.hbm [shape: bf16[1024,128], index: 0, kind: input, shape index: {}]   ;;  %s3915_s1 = inlined_call_operand.hbm [shape: bf16[128,384], index: 1, kind: input, shape index: {}]   ;;  %s3916_s2 = inlined_call_operand.vmem [shape: f32[1,256], index: 2, kind: input, shape index: {}]   ;;  %s3917_s3 = inlined_call_operand.hbm [shape: bf16[128,256], index: 3, kind: input, shape index: {}]   ;;  %s3918_s4 = inlined_call_operand.vmem [shape: f32[1,256], index: 4, kind: input, shape index: {}]   ;;  %s3919_s5 = inlined_call_operand.hbm [shape: f32[1024,128], index: 5, kind: output, shape index: {}]  }
   0x1   :  { %12 = vsyncpa [#allocation3 + $0x1], 0 }
   0x2   :  { %13 = vsyncpa [#allocation6], 0 }
   0x3   :  { %14 = vsyncpa [#allocation4], 0 }
   0x4   :  { %16 = vsyncpa [#allocation4 + $0x1], 0  ;;  %s2921_s18 = smov 0   ;;  %s2923_s19 = smov 0  }
   0x5   :  { %s2925_s20 = smov 0   ;;  %s2927_s21 = smov 0  }
   0x6 LB: > { %s2942_s22 = sadd.s32 4294967295, %s2876_s21   ;;  %s2088_s23 = sadd.s32 4294967294, %s2876_s21   ;;  %s2876_s21 = sphi %s2927_s21, %s3976_s21   ;;  %s2872_s20 = sphi %s2925_s20, %s3975_s20   ;;  %s2868_s19 = sphi %s2923_s19, %s3974_s19   ;;  %s2864_s18 = sphi %s2921_s18, %s3973_s18  }
   0x7   : > { %p42_p0 = scmp.ne.s32.totalorder %s2868_s19, %s2864_s18  ;;  %p3920_p1 = scmp.eq.s32.totalorder %s2942_s22, 0 }
   0x8   : > { %p156_p3 = scmp.eq.s32.totalorder %s2088_s23, 3  ;;  %p2089_p5 = scmp.ge.s32.totalorder %s2876_s21, 1 }
   0x9   : > { %p2951_p4 = por %p3920_p1, %p42_p0  ;;  %p163_p7 = scmp.lt.s32.totalorder %s2876_s21, 5 }
   0xa   : > { %p2956_p6 = por %p156_p3, %p42_p0  ;;  %s2878_s27 = smov [#allocation5]  }
   0xb   : > { %s3938_s24 = scalar_select %p2951_p4, 1, 0 }
   0xc   : > { %s3939_s25 = scalar_select %p2956_p6, 1, 0 }
   0xd   : > { %p2961_p8 = pnand %p2089_p5, %p163_p7  ;;  %s175_s28 = sshll.u32 %s2878_s27, 4  ;;  %s176_s28 = int_to_ptr.vmem [resolvable:$true] %s175_s28 }
   0xe   : > { %s2879_s30 = smov [#allocation7]   ;;  %s2720_s9 = scalar_lea.hbm %s3915_s1, 3072 }
   0xf   : > { %s3940_s26 = scalar_select %p2961_p8, 1, 0 }
  0x10   : > { %p2328_p9 = pneg %p2961_p8  ;;  %s191_s6 = sshll.u32 %s2879_s30, 4  ;;  %s2973_s6 = int_to_ptr.vmem [resolvable:$true] %s191_s6 }
  0x11   : > { %p2721_p11 = scmp.ne.s32.totalorder %s3915_s1, %s2720_s9  ;;  %p2727_p3 = scmp.lt.u32.totalorder %s2720_s9, %s3915_s1 }
  0x12   : > { %p2969_p10 = pnand %p2328_p9, %p3920_p1 }
  0x14   : > { %p2722_p12 = pneg %p2969_p10 }
  0x16   : > { %p2723_p13 = pnand %p2722_p12, %p2721_p11 }
  0x18   : > { %p2724_p0 = pneg %p2723_p13 }
  0x1a   : > { %p2729_p5 = pnand %p2727_p3, %p2724_p0 }
  0x1c   : > { %2732 = shalt.err (!%p2729_p5)
}
  0x1d   : > { %s2733_s14 = scalar_lea.vmem %s176_s28, 3072  ;;  %p2741_p2 = scmp.lt.s32.totalorder %s176_s28, %s176_s28 }
  0x1e   : > { %p2734_p7 = scmp.ne.s32.totalorder %s176_s28, %s2733_s14  ;;  %p2742_p6 = scmp.lt.s32.totalorder %s2733_s14, %s2733_s14 }
  0x20   : > { %p2736_p9 = pnand %p2734_p7, %p2722_p12  ;;  %p2743_p4 = por %p2742_p6, %p2741_p2 }
  0x22   : > { %p2737_p1 = pneg %p2736_p9 }
  0x24   : > { %p2744_p8 = pnand %p2743_p4, %p2737_p1 }
  0x26   : > { %2747 = shalt.err (!%p2744_p8)
}
  0x27   : > { %s2880_s15 = smov 192   ;;  %s2881_s16 = smov 12  }
  0x28   : > { %2331 = dma.hbm_to_vmem [thread:$0]  (!%p2969_p10), %s3915_s1, 3072, %s176_s28, [#allocation6], %s2880_s15, %s2880_s15, %s2881_s16  }
  0x29   : > { %s2748_s7 = scalar_lea.hbm %s3917_s3, 2048 }
  0x2a   : > { %p2749_p11 = scmp.ne.s32.totalorder %s3917_s3, %s2748_s7  ;;  %p2755_p4 = scmp.lt.u32.totalorder %s2748_s7, %s3917_s3 }
  0x2c   : > { %p2751_p1 = pnand %p2749_p11, %p2722_p12 }
  0x2e   : > { %p2752_p2 = pneg %p2751_p1 }
  0x30   : > { %p2757_p6 = pnand %p2755_p4, %p2752_p2 }
  0x32   : > { %2760 = shalt.err (!%p2757_p6)
}
  0x33   : > { %s2761_s28 = scalar_lea.vmem %s2973_s6, 2048  ;;  %p2769_p3 = scmp.lt.s32.totalorder %s2973_s6, %s2973_s6 }
  0x34   : > { %p2762_p8 = scmp.ne.s32.totalorder %s2973_s6, %s2761_s28  ;;  %p2770_p5 = scmp.lt.s32.totalorder %s2761_s28, %s2761_s28 }
  0x36   : > { %p2764_p13 = pnand %p2762_p8, %p2722_p12  ;;  %p2771_p7 = por %p2770_p5, %p2769_p3 }
  0x38   : > { %p2765_p0 = pneg %p2764_p13 }
  0x3a   : > { %p2772_p9 = pnand %p2771_p7, %p2765_p0 }
  0x3c   : > { %2775 = shalt.err (!%p2772_p9)
}
  0x3d   : > { %s2882_s12 = smov 128   ;;  %s2883_s13 = smov 8  }
  0x3e   : > { %2334 = dma.hbm_to_vmem [thread:$0]  (!%p2969_p10), %s3917_s3, 2048, %s2973_s6, [#allocation6], %s2882_s12, %s2882_s12, %s2883_s13  }
  0x3f   : > { %s3023_s16 = sadd.s32 1, %s2876_s21   ;;  %s29_s23 = sadd.s32 1, %s2872_s20 }
  0x40   : > { %s26_s17 = ssub.s32 %s2876_s21, %s3023_s16  ;;  %p36_p11 = scmp.ne.s32.totalorder %s2872_s20, %s2868_s19 }
  0x41   : > { %p27_p12 = scmp.eq.s32.totalorder %s26_s17, 0  ;;  %p37_p1 = scmp.eq.s32.totalorder %s2876_s21, 0 }
  0x42   : > { %p3942_p4 = scmp.eq.s32.totalorder %s2942_s22, 3  ;;  %p2345_p8 = scmp.lt.s32.totalorder %s2876_s21, 4 }
  0x43   : > { %s3032_s27 = scalar_select %p27_p12, %s2872_s20, %s29_s23  }
  0x44   : > { %p38_p2 = por %p37_p1, %p36_p11  ;;  %p3036_p6 = por %p3942_p4, %p36_p11 }
  0x45   : > { %s208_s29 = sand.u32 1, %s2872_s20   ;;  %s2226_s6 = sshll.u32 %s2876_s21, 11 }
  0x46   : > { %s2093_s7 = sshll.u32 %s208_s29, 7  ;;  %s3046_s10 = scalar_lea.hbm %s3914_s0, %s2226_s6 }
  0x47   : > { %s212_s11 = scalar_lea.vmem [#allocation2], %s2093_s7  ;;  %p3050_p10 = pnand %p2345_p8, %p38_p2 }
  0x48   : > { %s219_s28 = sshll.u32 %s212_s11, 4  ;;  %s3054_s13 = scalar_lea.sflag [#allocation3], %s208_s29  ;;  %s3048_s28 = int_to_ptr.vmem [resolvable:$true] %s219_s28 }
  0x49   : > { %s2776_s14 = scalar_lea.hbm %s3046_s10, 2048  ;;  %p2778_p0 = pneg %p3050_p10 }
  0x4a   : > { %p2777_p13 = scmp.ne.s32.totalorder %s3046_s10, %s2776_s14  ;;  %s2781_s23 = scalar_lea.hbm %s3914_s0, 8192 }
  0x4b   : > { %p2782_p7 = scmp.lt.u32.totalorder %s3046_s10, %s3914_s0  ;;  %p2783_p9 = scmp.lt.u32.totalorder %s2781_s23, %s2776_s14 }
  0x4c   : > { %p2779_p3 = pnand %p2778_p0, %p2777_p13  ;;  %p2785_p11 = scmp.lt.u32.totalorder %s2776_s14, %s3046_s10 }
  0x4d   : > { %p2784_p12 = por %p2783_p9, %p2782_p7 }
  0x4e   : > { %p2780_p5 = pneg %p2779_p3 }
  0x4f   : > { %p2786_p1 = por %p2785_p11, %p2784_p12 }
  0x51   : > { %p2787_p2 = pnand %p2786_p1, %p2780_p5 }
  0x53   : > { %2790 = shalt.err (!%p2787_p2)
}
  0x54   : > { %s2791_s29 = scalar_lea.vmem %s3048_s28, 2048  ;;  %s2884_s8 = smov [#allocation2]  }
  0x55   : > { %p2792_p4 = scmp.ne.s32.totalorder %s3048_s28, %s2791_s29  ;;  %s2796_s9 = sshll.u32 %s2884_s8, 4  ;;  %s2797_s9 = int_to_ptr.vmem [resolvable:$false] %s2796_s9 }
  0x56   : > { %s2798_s11 = scalar_lea.vmem %s2797_s9, 4096  ;;  %p2799_p3 = scmp.lt.s32.totalorder %s3048_s28, %s2797_s9 }
  0x57   : > { %p2794_p8 = pnand %p2792_p4, %p2778_p0  ;;  %p2800_p7 = scmp.lt.s32.totalorder %s2798_s11, %s2791_s29 }
  0x59   : > { %p2795_p13 = pneg %p2794_p8  ;;  %p2801_p9 = por %p2800_p7, %p2799_p3 }
  0x5b   : > { %p2802_p12 = pnand %p2801_p9, %p2795_p13 }
  0x5d   : > { %2805 = shalt.err (!%p2802_p12)
}
  0x5e   : > { %s2885_s14 = smov 64   ;;  %s2886_s15 = smov 4  }
  0x5f   : > { %2338 = dma.hbm_to_vmem [thread:$0]  (!%p3050_p10), %s3046_s10, 2048, %s3048_s28, %s3054_s13, %s2885_s14, %s2885_s14, %s2886_s15  }
  0x60   : > { %p3945_p0 = scmp.ne.s32.totalorder %s3940_s26, 0 }
  0x62   : > { %231 = sbr.rel (%p3945_p0) target bundleno = 881 (0x371), region = 40 }
  0x69   : > { %s3085_s17 = sand.u32 1, %s2868_s19   ;;  %p3946_p5 = scmp.ne.s32.totalorder %s3938_s24, 0 }
  0x6a   : > { %s2097_s23 = sshll.u32 %s3085_s17, 7  ;;  %s234_s7 = scalar_lea.sflag [#allocation3], %s3085_s17 }
  0x6b   : > { %s3089_s6 = scalar_lea.vmem [#allocation2], %s2097_s23 }
  0x6c   : > { %2851 = dma.done.wait (%p3946_p5), %s234_s7, 2048  }
  0x6d   : > { %2853 = vsyncadd (%p3946_p5), %s234_s7, 4294965248  ;;  %p3947_p10 = scmp.eq.s32.totalorder %s2942_s22, 0 }
  0x6f   : > { %2855 = dma.done.wait (%p3947_p10), [#allocation6], 5120   ;;  %p3948_p11 = pmov %p3947_p10 }
  0x70   : > { %v3925_v0 = vmov 0   ;;  %v2392_v1 = vld [vmem:[#allocation5 + $0x4] ss:$12 sps:$4 sm:$0xff]   ;;  %v2394_v2 = vld [vmem:[#allocation5] ss:$12 sps:$4 sm:$0xff]   ;;  %v2435_v31 = vld [vmem:[%s3089_s6 + $0x58] sm:$0xff]  }
  0x71   : > { %2857 = vsyncadd (%p3948_p11), [#allocation6], 4294962176  ;;  %595 = vmatprep.mubr.bf16.mxu0 %v3925_v0  ;;  %563 = vmatprep.subr.bf16.mxu0 %v2392_v1  ;;  %v2395_v3 = vld [vmem:[#allocation5 + $0x1c] ss:$12 sps:$4 sm:$0xff]   ;;  %v2397_v4 = vld [vmem:[#allocation5 + $0x18] ss:$12 sps:$4 sm:$0xff]  }
  0x72   : > { %564 = vmatpush1.bf16.msra.mxu0 %v2394_v2  ;;  %v2398_v5 = vld [vmem:[#allocation5 + $0x34] ss:$12 sps:$4 sm:$0xff]   ;;  %v2400_v6 = vld [vmem:[#allocation5 + $0x30] ss:$12 sps:$4 sm:$0xff]   ;;  %v2401_v7 = vld [vmem:[#allocation5 + $0x4c] ss:$12 sps:$4 sm:$0xff]  }
  0x73   : > { %565 = vmatprep.subr.bf16.mxu0 %v2395_v3  ;;  %v2403_v8 = vld [vmem:[#allocation5 + $0x48] ss:$12 sps:$4 sm:$0xff]   ;;  %v2404_v9 = vld [vmem:[#allocation5 + $0x64] ss:$12 sps:$4 sm:$0xff]   ;;  %v2406_v11 = vld [vmem:[#allocation5 + $0x60] ss:$12 sps:$4 sm:$0xff]  }
  0x74   : > { %v2417_v10 = vld [vmem:[#allocation5 + $0x8] ss:$12 sps:$4 sm:$0xff]   ;;  %v2420_v12 = vld [vmem:[#allocation5 + $0x20] ss:$12 sps:$4 sm:$0xff]   ;;  %v2409_v14 = vld [vmem:[#allocation5 + $0x78] ss:$12 sps:$4 sm:$0xff]  }
  0x75   : > { %2300 = vmatprep.subr.bf16.mxu1 %v2417_v10  ;;  %v2407_v13 = vld [vmem:[#allocation5 + $0x7c] ss:$12 sps:$4 sm:$0xff]   ;;  %v2423_v15 = vld [vmem:[#allocation5 + $0x38] ss:$12 sps:$4 sm:$0xff]   ;;  %v2410_v16 = vld [vmem:[#allocation5 + $0x94] ss:$12 sps:$4 sm:$0xff]  }
  0x76   : > { %566 = vmatpush1.bf16.msra.mxu0 %v2397_v4  ;;  %2308 = vmatpush3.bf16.msra.mxu1 %v2417_v10  ;;  %v2424_v17 = vld [vmem:[#allocation5 + $0x50] ss:$12 sps:$4 sm:$0xff]   ;;  %v2413_v19 = vld [vmem:[#allocation5 + $0xac] ss:$12 sps:$4 sm:$0xff]   ;;  %v2426_v20 = vld [vmem:[#allocation5 + $0x68] ss:$12 sps:$4 sm:$0xff]  }
  0x77   : > { %567 = vmatprep.subr.bf16.mxu0 %v2398_v5  ;;  %2301 = vmatprep.subr.bf16.mxu1 %v2420_v12  ;;  %v2412_v18 = vld [vmem:[#allocation5 + $0x90] ss:$12 sps:$4 sm:$0xff]   ;;  %v2415_v21 = vld [vmem:[#allocation5 + $0xa8] ss:$12 sps:$4 sm:$0xff]   ;;  %v3101_v22 = vld [vmem:[%s3089_s6 + $0x40] sm:$0xff]   ;;  %s2100_s12 = sshll.u32 %s3085_s17, 8 }
  0x78   : > { %v2427_v23 = vld [vmem:[#allocation5 + $0x80] ss:$12 sps:$4 sm:$0xff]   ;;  %2284 = vmatprep.mubr.bf16.mxu1 %v3101_v22  ;;  %v2429_v25 = vld [vmem:[#allocation5 + $0x98] ss:$12 sps:$4 sm:$0xff]   ;;  %v2430_v26 = vld [vmem:[#allocation5 + $0xb0] ss:$12 sps:$4 sm:$0xff]  }
  0x79   : > { %v3105_v24 = vld [vmem:[%s3089_s6] sm:$0xff]   ;;  %v3110_v27 = vld [vmem:[%s3089_s6 + $0x8] sm:$0xff]   ;;  %v2434_v29 = vld [vmem:[%s3089_s6 + $0x50] sm:$0xff]   ;;  %s3655_s13 = scalar_lea.vmem [#allocation8], %s2100_s12  ;;  %s2227_s29 = sshll.u32 %s2942_s22, 12 }
  0x7a   : > { %568 = vmatpush1.bf16.msra.mxu0 %v2400_v6  ;;  %2309 = vmatpush3.bf16.msra.mxu1 %v2420_v12  ;;  %v2433_v28 = vld [vmem:[%s3089_s6 + $0x48] sm:$0xff]   ;;  %v2419_v30 = vld [vmem:[%s3089_s6 + $0x10] sm:$0xff]   ;;  %v2436_v32 = vld [vmem:[%s3089_s6 + $0x60] sm:$0xff]   ;;  %s1996_s8 = sshll.u32 %s3655_s13, 4  ;;  %s3866_s14 = scalar_lea.hbm %s3919_s5, %s2227_s29  ;;  %s3868_s8 = int_to_ptr.vmem [resolvable:$true] %s1996_s8 }
  0x7b   : > { %569 = vmatprep.subr.bf16.mxu0 %v2401_v7  ;;  %2302 = vmatprep.subr.bf16.mxu1 %v2423_v15  ;;  %v2421_v33 = vld [vmem:[%s3089_s6 + $0x18] sm:$0xff]   ;;  %v2437_v34 = vld [vmem:[%s3089_s6 + $0x68] sm:$0xff]   ;;  %v2438_v35 = vld [vmem:[%s3089_s6 + $0x70] sm:$0xff]   ;;  %s1983_s22 = scalar_lea.sflag [#allocation4], %s3085_s17  ;;  %s2806_s15 = scalar_lea.vmem %s3868_s8, 4096 }
  0x7c   : > { %v2422_v36 = vld [vmem:[%s3089_s6 + $0x20] sm:$0xff]   ;;  %v2439_v37 = vld [vmem:[%s3089_s6 + $0x78] sm:$0xff]   ;;  %v2425_v38 = vld [vmem:[%s3089_s6 + $0x28] sm:$0xff]   ;;  %p2807_p1 = scmp.ne.s32.totalorder %s3868_s8, %s2806_s15  ;;  %s2888_s23 = smov [#allocation8]  }
  0x7d   : > { %v2428_v39 = vld [vmem:[%s3089_s6 + $0x30] sm:$0xff]   ;;  %v2431_v40 = vld [vmem:[%s3089_s6 + $0x38] sm:$0xff]   ;;  %v2442_v41 = vld [vmem:[#allocation7 + $0x4] ss:$8 sps:$4 sm:$0xff]   ;;  %s2810_s7 = sshll.u32 %s2888_s23, 4  ;;  %s2811_s7 = int_to_ptr.vmem [resolvable:$false] %s2810_s7 }
  0x7e   : > { %570 = vmatpush1.bf16.msra.mxu0 %v2403_v8  ;;  %2310 = vmatpush3.bf16.msra.mxu1 %v2423_v15  ;;  %v2440_v42 = vld [vmem:[#allocation7] ss:$8 sps:$4 sm:$0xff]   ;;  %v2445_v43 = vld [vmem:[#allocation7 + $0x14] ss:$8 sps:$4 sm:$0xff]   ;;  %v2443_v44 = vld [vmem:[#allocation7 + $0x10] ss:$8 sps:$4 sm:$0xff]   ;;  %p2808_p2 = pnand %p2807_p1, %p3036_p6  ;;  %p2813_p8 = scmp.lt.s32.totalorder %s3868_s8, %s2811_s7 }
  0x7f   : > { %571 = vmatprep.subr.bf16.mxu0 %v2404_v9  ;;  %2303 = vmatprep.subr.bf16.mxu1 %v2424_v17  ;;  %v2448_v45 = vld [vmem:[#allocation7 + $0x24] ss:$8 sps:$4 sm:$0xff]   ;;  %v2446_v46 = vld [vmem:[#allocation7 + $0x20] ss:$8 sps:$4 sm:$0xff]   ;;  %v2451_v47 = vld [vmem:[#allocation7 + $0x34] ss:$8 sps:$4 sm:$0xff]  }
  0x80   : > { %v2449_v48 = vld [vmem:[#allocation7 + $0x30] ss:$8 sps:$4 sm:$0xff]   ;;  %v2454_v49 = vld [vmem:[#allocation7 + $0x44] ss:$8 sps:$4 sm:$0xff]   ;;  %v2452_v50 = vld [vmem:[#allocation7 + $0x40] ss:$8 sps:$4 sm:$0xff]   ;;  %p2809_p4 = pneg %p2808_p2 }
  0x81   : > { %v2457_v54 = vld [vmem:[#allocation7 + $0x54] ss:$8 sps:$4 sm:$0xff]   ;;  %v2455_v56 = vld [vmem:[#allocation7 + $0x50] ss:$8 sps:$4 sm:$0xff]   ;;  %v2460_v57 = vld [vmem:[#allocation7 + $0x64] ss:$8 sps:$4 sm:$0xff]  }
  0x82   : > { %572 = vmatpush1.bf16.msra.mxu0 %v2406_v11  ;;  %2311 = vmatpush3.bf16.msra.mxu1 %v2424_v17  ;;  %v2458_v58 = vld [vmem:[#allocation7 + $0x60] ss:$8 sps:$4 sm:$0xff]   ;;  %v2463_v63 = vld [vmem:[#allocation7 + $0x74] ss:$8 sps:$4 sm:$0xff]   ;;  %v2461_v1 = vld [vmem:[#allocation7 + $0x70] ss:$8 sps:$4 sm:$0xff]  }
  0x83   : > { %573 = vmatprep.subr.bf16.mxu0 %v2407_v13  ;;  %2304 = vmatprep.subr.bf16.mxu1 %v2426_v20  ;;  %s2812_s6 = scalar_lea.vmem %s2811_s7, 8192 }
  0x84   : > { %p2814_p13 = scmp.lt.s32.totalorder %s2812_s6, %s2806_s15 }
  0x86   : > { %574 = vmatpush1.bf16.msra.mxu0 %v2409_v14  ;;  %2312 = vmatpush3.bf16.msra.mxu1 %v2426_v20  ;;  %p2815_p3 = por %p2814_p13, %p2813_p8 }
  0x87   : > { %575 = vmatprep.subr.bf16.mxu0 %v2410_v16  ;;  %2305 = vmatprep.subr.bf16.mxu1 %v2427_v23 }
  0x88   : > { %p2816_p7 = pnand %p2815_p3, %p2809_p4 }
  0x8a   : > { %576 = vmatpush1.bf16.msra.mxu0 %v2412_v18  ;;  %2313 = vmatpush3.bf16.msra.mxu1 %v2427_v23 }
  0x8b   : > { %577 = vmatprep.subr.bf16.mxu0 %v2413_v19  ;;  %2306 = vmatprep.subr.bf16.mxu1 %v2429_v25 }
  0x8e   : > { %578 = vmatpush1.bf16.msra.mxu0 %v2415_v21  ;;  %2314 = vmatpush3.bf16.msra.mxu1 %v2429_v25 }
  0x8f   : > { %2252 = vmatprep.subr.bf16.mxu0 %v2417_v10  ;;  %2307 = vmatprep.subr.bf16.mxu1 %v2430_v26 }
  0x91   : > { %596 = vmatmul.mubr.bf16.vlgmr.msra.gmra.mrb[0].mxu0 %v3105_v24 }
  0x92   : > { %2253 = vmatpush3.bf16.msra.mxu0 %v2417_v10  ;;  %605 = vmatprep.mubr.bf16.mxu0 %v3925_v0 }
  0x93   : > { %2254 = vmatprep.subr.bf16.mxu0 %v2420_v12  ;;  %2315 = vmatpush3.bf16.msra.mxu1 %v2430_v26 }
  0x94   : > { %1437 = vmatprep.subr.bf16.mxu1 %v2442_v41  ;;  %v917_v41 = vld [vmem:[%s3916_s2] sm:$0x3] }
  0x96   : > { %2255 = vmatpush3.bf16.msra.mxu0 %v2420_v12  ;;  %2285 = vmatmul.mubr.bf16.vlgmr.msra.gmra.mrb[0].mxu1 %v2433_v28 }
  0x97   : > { %2256 = vmatprep.subr.bf16.mxu0 %v2423_v15  ;;  %2288 = vmatprep.mubr.bf16.mxu1 %v2434_v29 }
  0x98   : > { %1438 = vmatpush1.bf16.msra.mxu1 %v2440_v42 }
  0x99   : > { %606 = vmatmul.mubr.bf16.gmra.mrb[4].mxu0 %v3110_v27  ;;  %1439 = vmatprep.subr.bf16.mxu1 %v2445_v43 }
  0x9a   : > { %615 = vmatprep.mubr.bf16.mxu0 %v3925_v0  ;;  %2257 = vmatpush3.bf16.msra.mxu0 %v2423_v15 }
  0x9b   : > { %2258 = vmatprep.subr.bf16.mxu0 %v2424_v17 }
  0x9c   : > { %1440 = vmatpush1.bf16.msra.mxu1 %v2443_v44 }
  0x9d   : > { %1441 = vmatprep.subr.bf16.mxu1 %v2448_v45 }
  0x9e   : > { %2259 = vmatpush3.bf16.msra.mxu0 %v2424_v17  ;;  %2289 = vmatmul.mubr.bf16.gmra.mrb[4].mxu1 %v2435_v31 }
  0x9f   : > { %2260 = vmatprep.subr.bf16.mxu0 %v2426_v20  ;;  %2292 = vmatprep.mubr.bf16.mxu1 %v2436_v32 }
  0xa0   : > { %1442 = vmatpush1.bf16.msra.mxu1 %v2446_v46 }
  0xa1   : > { %616 = vmatmul.mubr.bf16.gmra.mrb[8].mxu0 %v2419_v30  ;;  %1443 = vmatprep.subr.bf16.mxu1 %v2451_v47 }
  0xa2   : > { %625 = vmatprep.mubr.bf16.mxu0 %v3925_v0  ;;  %2261 = vmatpush3.bf16.msra.mxu0 %v2426_v20 }
  0xa3   : > { %2262 = vmatprep.subr.bf16.mxu0 %v2427_v23 }
  0xa4   : > { %1444 = vmatpush1.bf16.msra.mxu1 %v2449_v48 }
  0xa5   : > { %1445 = vmatprep.subr.bf16.mxu1 %v2454_v49 }
  0xa6   : > { %2263 = vmatpush3.bf16.msra.mxu0 %v2427_v23  ;;  %2293 = vmatmul.mubr.bf16.gmra.mrb[8].mxu1 %v2437_v34 }
  0xa7   : > { %2264 = vmatprep.subr.bf16.mxu0 %v2429_v25  ;;  %2296 = vmatprep.mubr.bf16.mxu1 %v2438_v35 }
  0xa8   : > { %1446 = vmatpush1.bf16.msra.mxu1 %v2452_v50 }
  0xa9   : > { %626 = vmatmul.mubr.bf16.gmra.mrb[12].mxu0 %v2421_v33  ;;  %1447 = vmatprep.subr.bf16.mxu1 %v2457_v54 }
  0xaa   : > { %635 = vmatprep.mubr.bf16.mxu0 %v3925_v0  ;;  %2265 = vmatpush3.bf16.msra.mxu0 %v2429_v25 }
  0xab   : > { %2266 = vmatprep.subr.bf16.mxu0 %v2430_v26 }
  0xac   : > { %1448 = vmatpush1.bf16.msra.mxu1 %v2455_v56 }
  0xad   : > { %1449 = vmatprep.subr.bf16.mxu1 %v2460_v57 }
  0xae   : > { %2267 = vmatpush3.bf16.msra.mxu0 %v2430_v26  ;;  %2297 = vmatmul.mubr.bf16.gmra.mrb[12].mxu1 %v2439_v37 }
  0xaf   : > { %1469 = vmatprep.mubr.bf16.mxu1 %v3925_v0 }
  0xb0   : > { %1450 = vmatpush1.bf16.msra.mxu1 %v2458_v58 }
  0xb1   : > { %636 = vmatmul.mubr.bf16.gmra.mrb[16].mxu0 %v2422_v36  ;;  %1451 = vmatprep.subr.bf16.mxu1 %v2463_v63 }
  0xb2   : > { %645 = vmatprep.mubr.bf16.mxu0 %v3925_v0 }
  0xb4   : > { %1452 = vmatpush1.bf16.msra.mxu1 %v2461_v1 }
  0xb9   : > { %646 = vmatmul.mubr.bf16.gmra.mrb[20].mxu0 %v2425_v38 }
  0xba   : > { %655 = vmatprep.mubr.bf16.mxu0 %v3925_v0 }
  0xc1   : > { %656 = vmatmul.mubr.bf16.gmra.mrb[24].mxu0 %v2428_v39 }
  0xc2   : > { %665 = vmatprep.mubr.bf16.mxu0 %v3925_v0 }
  0xc9   : > { %666 = vmatmul.mubr.bf16.gmra.mrb[28].mxu0 %v2431_v40 }
  0xca   : > { %675 = vmatprep.mubr.bf16.mxu0 %v3925_v0 }
  0xd1   : > { %676 = vmatmul.mubr.bf16.gmra.mrb[32].mxu0 %v3101_v22 }
  0xd2   : > { %685 = vmatprep.mubr.bf16.mxu0 %v3925_v0 }
  0xd9   : > { %686 = vmatmul.mubr.bf16.gmra.mrb[36].mxu0 %v2433_v28 }
  0xda   : > { %695 = vmatprep.mubr.bf16.mxu0 %v3925_v0 }
  0xe1   : > { %696 = vmatmul.mubr.bf16.gmra.mrb[40].mxu0 %v2434_v29 }
  0xe2   : > { %705 = vmatprep.mubr.bf16.mxu0 %v3925_v0 }
  0xe9   : > { %706 = vmatmul.mubr.bf16.gmra.mrb[44].mxu0 %v2435_v31 }
  0xea   : > { %715 = vmatprep.mubr.bf16.mxu0 %v3925_v0 }
  0xf1   : > { %716 = vmatmul.mubr.bf16.gmra.mrb[48].mxu0 %v2436_v32 }
  0xf2   : > { %725 = vmatprep.mubr.bf16.mxu0 %v3925_v0 }
  0xf9   : > { %726 = vmatmul.mubr.bf16.gmra.mrb[52].mxu0 %v2437_v34 }
  0xfa   : > { %735 = vmatprep.mubr.bf16.mxu0 %v3925_v0 }
 0x101   : > { %736 = vmatmul.mubr.bf16.gmra.mrb[56].mxu0 %v2438_v35 }
 0x102   : > { %745 = vmatprep.mubr.bf16.mxu0 %v3925_v0 }
 0x109   : > { %746 = vmatmul.mubr.bf16.gmra.mrb[60].mxu0 %v2439_v37 }
 0x10a   : > { %2268 = vmatprep.mubr.bf16.mxu0 %v3105_v24 }
 0x111   : > { %2269 = vmatmul.mubr.bf16.vlgmr.msra.gmra.mrb[64].mxu0 %v3110_v27 }
 0x112   : > { %2272 = vmatprep.mubr.bf16.mxu0 %v2419_v30 }
 0x119   : > { %2273 = vmatmul.mubr.bf16.gmra.mrb[68].mxu0 %v2421_v33  ;;  %v919_v33 = vlaneseq }
 0x11a   : > { %2276 = vmatprep.mubr.bf16.mxu0 %v2422_v36 }
 0x11b   : > { %v3216_v35 = vshrl.u32 %v919_v33, 7 }
 0x11d   : > { %3952 = vst [vmem:[#allocation15_spill] sm:$0xff] %v3216_v35  ;;  %v3924_v42 = vsub.s32 0, %v3216_v35 }
 0x11f   : > { %v3239_v45 = vrot.slane %v917_v41, %v3924_v42 }
 0x121   : > { %2277 = vmatmul.mubr.bf16.gmra.mrb[72].mxu0 %v2425_v38  ;;  %v3923_v38 = vsub.s32 1, %v3216_v35 }
 0x122   : > { %2280 = vmatprep.mubr.bf16.mxu0 %v2428_v39 }
 0x123   : > { %v3233_v43 = vrot.slane %v917_v41, %v3923_v38 }
 0x129   : > { %2281 = vmatmul.mubr.bf16.gmra.mrb[76].mxu0 %v2431_v40 }
 0x164   : > { %v3144_v51 = vpop.f32.mrb[0].mxu0 }
 0x165   : > { %v3146_v52 = vpop.f32.mrb[1].mxu0 }
 0x166   : > { %v3148_v53 = vpop.f32.mrb[2].mxu0  ;;  %v929_v54 = vadd.f32 %v3239_v45, %v3146_v52 }
 0x167   : > { %v3150_v55 = vpop.f32.mrb[3].mxu0 }
 0x168   : > { %v931_v57 = vadd.f32 %v3239_v45, %v3150_v55  ;;  %v2141_v1 = vmul.f32 -1.442695, %v929_v54 }
 0x169   : > { %v2286_v2 = vpop.f32.mrb[0].mxu1 }
 0x16a   : > { %v854_v3 = vpop.f32.mrb[1].mxu1  ;;  %v966_v33 = vadd.f32 %v2286_v2, %v3233_v43  ;;  %v2142_v42 = vmul.f32 -1.442695, %v931_v57  ;;  %2464 = vpow2.f32 %v2141_v1 }
 0x16b   : > { %v2287_v4 = vpop.f32.mrb[2].mxu1  ;;  %v962_v47 = vadd.f32 %v3233_v43, %v854_v3 }
 0x16c   : > { %v3152_v59 = vpop.f32.mrb[4].mxu0  ;;  %v857_v6 = vpop.f32.mrb[3].mxu1  ;;  %v968_v52 = vadd.f32 %v2287_v4, %v3233_v43 }
 0x16d   : > { %v3154_v60 = vpop.f32.mrb[5].mxu0  ;;  %v964_v50 = vadd.f32 %v3233_v43, %v857_v6  ;;  %v1201_v56 = vmax.f32 %v962_v47, 0.0 }
 0x16e   : > { %v3156_v61 = vpop.f32.mrb[6].mxu0  ;;  %v933_v2 = vadd.f32 %v3239_v45, %v3154_v60 }
 0x16f   : > { %v3158_v62 = vpop.f32.mrb[7].mxu0  ;;  %v1202_v58 = vmax.f32 %v964_v50, 0.0 }
 0x170   : > { %v2143_v4 = vmul.f32 -1.442695, %v933_v2 }
 0x171   : > { %v3168_v10 = vpop.f32.mrb[4].mxu1 }
 0x172   : > { %v3170_v11 = vpop.f32.mrb[5].mxu1 }
 0x173   : > { %v3172_v12 = vpop.f32.mrb[6].mxu1 }
 0x174   : > { %v3160_v5 = vpop.f32.mrb[8].mxu0  ;;  %v3176_v14 = vpop.f32.mrb[7].mxu1 }
 0x175   : > { %v3162_v7 = vpop.f32.mrb[9].mxu0 }
 0x176   : > { %v3164_v8 = vpop.f32.mrb[10].mxu0 }
 0x177   : > { %v3166_v9 = vpop.f32.mrb[11].mxu0 }
 0x179   : > { %v3184_v18 = vpop.f32.mrb[8].mxu1 }
 0x17a   : > { %v3186_v19 = vpop.f32.mrb[9].mxu1 }
 0x17b   : > { %v3188_v20 = vpop.f32.mrb[10].mxu1 }
 0x17c   : > { %v3174_v13 = vpop.f32.mrb[12].mxu0  ;;  %v3192_v22 = vpop.f32.mrb[11].mxu1 }
 0x17d   : > { %v3178_v15 = vpop.f32.mrb[13].mxu0 }
 0x17e   : > { %v3180_v16 = vpop.f32.mrb[14].mxu0 }
 0x17f   : > { %v3182_v17 = vpop.f32.mrb[15].mxu0 }
 0x181   : > { %v3200_v26 = vpop.f32.mrb[12].mxu1 }
 0x182   : > { %v3202_v27 = vpop.f32.mrb[13].mxu1 }
 0x183   : > { %v3204_v28 = vpop.f32.mrb[14].mxu1 }
 0x184   : > { %v3190_v21 = vpop.f32.mrb[16].mxu0  ;;  %v3208_v30 = vpop.f32.mrb[15].mxu1 }
 0x185   : > { %3949 = vst [vmem:[#allocation12_spill] sm:$0xff] %v3190_v21  ;;  %v3194_v23 = vpop.f32.mrb[17].mxu0 }
 0x186   : > { %v3196_v24 = vpop.f32.mrb[18].mxu0 }
 0x187   : > { %3950 = vst [vmem:[#allocation13_spill] sm:$0xff] %v3196_v24  ;;  %v3198_v25 = vpop.f32.mrb[19].mxu0 }
 0x18c   : > { %v3206_v29 = vpop.f32.mrb[20].mxu0 }
 0x18d   : > { %v3210_v31 = vpop.f32.mrb[21].mxu0 }
 0x18e   : > { %v3212_v32 = vpop.f32.mrb[22].mxu0 }
 0x18f   : > { %3951 = vst [vmem:[#allocation14_spill] sm:$0xff] %v3212_v32  ;;  %v3214_v34 = vpop.f32.mrb[23].mxu0 }
 0x194   : > { %v3218_v36 = vpop.f32.mrb[24].mxu0 }
 0x195   : > { %3953 = vst [vmem:[#allocation16_spill] sm:$0xff] %v3218_v36  ;;  %v3220_v37 = vpop.f32.mrb[25].mxu0 }
 0x196   : > { %v3223_v39 = vpop.f32.mrb[26].mxu0 }
 0x197   : > { %3954 = vst [vmem:[#allocation17_spill] sm:$0xff] %v3223_v39  ;;  %v3225_v40 = vpop.f32.mrb[27].mxu0 }
 0x19c   : > { %v3235_v44 = vpop.f32.mrb[28].mxu0 }
 0x19d   : > { %3955 = vst [vmem:[#allocation18_spill] sm:$0xff] %v3235_v44  ;;  %v3241_v46 = vpop.f32.mrb[29].mxu0 }
 0x19e   : > { %v3244_v48 = vpop.f32.mrb[30].mxu0 }
 0x19f   : > { %3956 = vst [vmem:[#allocation19_spill] sm:$0xff] %v3244_v48  ;;  %v3246_v49 = vpop.f32.mrb[31].mxu0 }
 0x1a4   : > { %v3253_v63 = vpop.f32.mrb[32].mxu0 }
 0x1a5   : > { %v3257_v3 = vsub.f32 %v1201_v56, %v3253_v63  ;;  %v679_v41 = vpop.f32.mrb[33].mxu0  ;;  %v1203_v56 = vmax.f32 %v966_v33, 0.0  ;;  %v935_v33 = vadd.f32 %v3239_v45, %v3158_v62 }
 0x1a6   : > { %v961_v38 = vadd.f32 %v3239_v45, %v679_v41  ;;  %v3260_v6 = vpop.f32.mrb[34].mxu0  ;;  %v1204_v41 = vmax.f32 %v968_v52, 0.0 }
 0x1a7   : > { %v3264_v47 = vsub.f32 %v1202_v58, %v3260_v6  ;;  %v683_v55 = vpop.f32.mrb[35].mxu0  ;;  %v2144_v39 = vmul.f32 -1.442695, %v935_v33 }
 0x1a8   : > { %v2157_v50 = vmul.f32 -1.442695, %v961_v38  ;;  %v963_v54 = vadd.f32 %v3239_v45, %v683_v55  ;;  %v970_v38 = vadd.f32 %v3233_v43, %v3170_v11 }
 0x1aa   : > { %2466 = vpow2.f32 %v2157_v50  ;;  %v2158_v0 = vmul.f32 -1.442695, %v963_v54  ;;  %v1205_v54 = vmax.f32 %v970_v38, 0.0 }
 0x1ab   : > { %2468 = vpow2.f32 %v2142_v42 }
 0x1ac   : > { %2470 = vpow2.f32 %v2158_v0  ;;  %v3269_v57 = vpop.f32.mrb[36].mxu0  ;;  %v972_v0 = vadd.f32 %v3233_v43, %v3176_v14  ;;  %v974_v14 = vadd.f32 %v3168_v10, %v3233_v43 }
 0x1ad   : > { %v3272_v58 = vsub.f32 %v1203_v56, %v3269_v57  ;;  %v689_v35 = vpop.f32.mrb[37].mxu0  ;;  %2472 = vpow2.f32 %v2143_v4 }
 0x1ae   : > { %v965_v1 = vadd.f32 %v3239_v45, %v689_v35  ;;  %v3277_v55 = vpop.f32.mrb[38].mxu0  ;;  %v2465_v35 = vpop.eup %2464  ;;  %v1206_v2 = vmax.f32 %v972_v0, 0.0 }
 0x1af   : > { %v3280_v60 = vsub.f32 %v1204_v41, %v3277_v55  ;;  %v693_v42 = vpop.f32.mrb[39].mxu0  ;;  %v1089_v38 = vadd.f32 1.0, %v2465_v35 }
 0x1b0   : > { %v2159_v52 = vmul.f32 -1.442695, %v965_v1  ;;  %v967_v50 = vadd.f32 %v3239_v45, %v693_v42  ;;  %v937_v42 = vadd.f32 %v3239_v45, %v3162_v7 }
 0x1b2   : > { %2474 = vpow2.f32 %v2159_v52  ;;  %v2160_v11 = vmul.f32 -1.442695, %v967_v50  ;;  %v976_v50 = vadd.f32 %v3172_v12, %v3233_v43  ;;  %v2145_v44 = vmul.f32 -1.442695, %v937_v42 }
 0x1b4   : > { %v2467_v56 = vpop.eup %2466  ;;  %2476 = vpow2.f32 %v2160_v11  ;;  %v3287_v41 = vpop.f32.mrb[40].mxu0  ;;  %v939_v11 = vadd.f32 %v3239_v45, %v3166_v9  ;;  %v1208_v12 = vmax.f32 %v976_v50, 0.0 }
 0x1b5   : > { %v2469_v48 = vpop.eup %2468  ;;  %v1105_v36 = vadd.f32 1.0, %v2467_v56  ;;  %v3292_v62 = vsub.f32 %v1205_v54, %v3287_v41  ;;  %v699_v1 = vpop.f32.mrb[41].mxu0 }
 0x1b6   : > { %v2471_v4 = vpop.eup %2470  ;;  %v969_v0 = vadd.f32 %v3239_v45, %v699_v1  ;;  %v3297_v33 = vpop.f32.mrb[42].mxu0  ;;  %v1090_v56 = vadd.f32 1.0, %v2469_v48  ;;  %v1207_v1 = vmax.f32 %v974_v14, 0.0  ;;  %v978_v48 = vadd.f32 %v3233_v43, %v3186_v19 }
 0x1b7   : > { %2478 = vrcp.f32 %v1105_v36  ;;  %v1106_v52 = vadd.f32 1.0, %v2471_v4  ;;  %v3302_v10 = vsub.f32 %v1206_v2, %v3297_v33  ;;  %v703_v54 = vpop.f32.mrb[43].mxu0  ;;  %v2473_v4 = vpop.eup %2472  ;;  %v2146_v2 = vmul.f32 -1.442695, %v939_v11 }
 0x1b8   : > { %2480 = vpow2.f32 %v2144_v39  ;;  %v2161_v35 = vmul.f32 -1.442695, %v969_v0  ;;  %v971_v7 = vadd.f32 %v3239_v45, %v703_v54  ;;  %v1091_v42 = vadd.f32 1.0, %v2473_v4 }
 0x1b9   : > { %2482 = vrcp.f32 %v1106_v52  ;;  %v980_v11 = vadd.f32 %v3233_v43, %v3192_v22  ;;  %v941_v19 = vadd.f32 %v3239_v45, %v3178_v15 }
 0x1ba   : > { %2484 = vpow2.f32 %v2161_v35  ;;  %v2162_v36 = vmul.f32 -1.442695, %v971_v7 }
 0x1bb   : > { %2486 = vrcp.f32 %v1089_v38  ;;  %v1210_v22 = vmax.f32 %v980_v11, 0.0 }
 0x1bc   : > { %v2475_v24 = vpop.eup %2474  ;;  %2488 = vpow2.f32 %v2162_v36  ;;  %v3307_v32 = vpop.f32.mrb[44].mxu0  ;;  %v943_v36 = vadd.f32 %v3239_v45, %v3182_v17  ;;  %v945_v17 = vadd.f32 %v3239_v45, %v3194_v23 }
 0x1bd   : > { %2490 = vrcp.f32 %v1090_v56  ;;  %v1107_v39 = vadd.f32 1.0, %v2475_v24  ;;  %v3310_v9 = vsub.f32 %v1207_v1, %v3307_v32  ;;  %v709_v0 = vpop.f32.mrb[45].mxu0  ;;  %v1209_v56 = vmax.f32 %v978_v48, 0.0 }
 0x1be   : > { %v2477_v14 = vpop.eup %2476  ;;  %2492 = vpow2.f32 %v2145_v44  ;;  %v973_v38 = vadd.f32 %v3239_v45, %v709_v0  ;;  %v3315_v52 = vpop.f32.mrb[46].mxu0  ;;  %v2147_v0 = vmul.f32 -1.442695, %v941_v19  ;;  %v2148_v19 = vmul.f32 -1.442695, %v943_v36 }
 0x1bf   : > { %2494 = vrcp.f32 %v1107_v39  ;;  %v1108_v50 = vadd.f32 1.0, %v2477_v14  ;;  %v3318_v54 = vsub.f32 %v1208_v12, %v3315_v52  ;;  %v713_v24 = vpop.f32.mrb[47].mxu0 }
 0x1c0   : > { %2496 = vpow2.f32 %v2146_v2  ;;  %v2163_v35 = vmul.f32 -1.442695, %v973_v38  ;;  %v975_v44 = vadd.f32 %v3239_v45, %v713_v24 }
 0x1c1   : > { %v2479_v7 = vpop.eup %2478  ;;  %2498 = vrcp.f32 %v1108_v50 }
 0x1c2   : > { %v2481_v1 = vpop.eup %2480  ;;  %2500 = vpow2.f32 %v2163_v35  ;;  %v2164_v4 = vmul.f32 -1.442695, %v975_v44  ;;  %v1265_v12 = vmul.f32 %v2479_v7, %v3257_v3  ;;  %v982_v3 = vadd.f32 %v3184_v18, %v3233_v43 }
 0x1c3   : > { %v2483_v39 = vpop.eup %2482  ;;  %2502 = vrcp.f32 %v1091_v42  ;;  %v984_v7 = vadd.f32 %v3188_v20, %v3233_v43 }
 0x1c4   : > { %v2485_v2 = vpop.eup %2484  ;;  %2504 = vpow2.f32 %v2164_v4  ;;  %v3328_v15 = vpop.f32.mrb[48].mxu0  ;;  %v1266_v14 = vmul.f32 %v2483_v39, %v3264_v47  ;;  %v3332_v48 = vadd.f32 %v1265_v12, %v3253_v63  ;;  %v947_v47 = vadd.f32 %v3239_v45, %v3198_v25 }
 0x1c5   : > { %v3334_v38 = vpop.eup %2486  ;;  %v1109_v50 = vadd.f32 1.0, %v2485_v2  ;;  %v3341_v42 = vsub.f32 %v1209_v56, %v3328_v15  ;;  %v719_v24 = vpop.f32.mrb[49].mxu0  ;;  %v2149_v2 = vmul.f32 -1.442695, %v945_v17 }
 0x1c6   : > { %3957 = vst [vmem:[#allocation20_spill] sm:$0xff] %v3332_v48  ;;  %v2489_v11 = vpop.eup %2488  ;;  %v977_v63 = vadd.f32 %v3239_v45, %v719_v24  ;;  %v3346_v35 = vpop.f32.mrb[50].mxu0  ;;  %v3349_v44 = vadd.f32 %v1266_v14, %v3260_v6  ;;  %v1211_v6 = vmax.f32 %v982_v3, 0.0  ;;  %v2150_v24 = vmul.f32 -1.442695, %v947_v47 }
 0x1c7   : > { %v3351_v23 = vpop.eup %2490  ;;  %2506 = vrcp.f32 %v1109_v50  ;;  %v1110_v18 = vadd.f32 1.0, %v2489_v11  ;;  %v3356_v56 = vsub.f32 %v1210_v22, %v3346_v35  ;;  %v723_v36 = vpop.f32.mrb[51].mxu0  ;;  %v1212_v22 = vmax.f32 %v984_v7, 0.0 }
 0x1c8   : > { %3958 = vst [vmem:[#allocation21_spill] sm:$0xff] %v3349_v44  ;;  %v2493_v4 = vpop.eup %2492  ;;  %2508 = vpow2.f32 %v2147_v0  ;;  %v2165_v25 = vmul.f32 -1.442695, %v977_v63  ;;  %v979_v12 = vadd.f32 %v3239_v45, %v723_v36  ;;  %v1092_v44 = vadd.f32 1.0, %v2481_v1 }
 0x1c9   : > { %v2495_v39 = vpop.eup %2494  ;;  %2510 = vrcp.f32 %v1110_v18  ;;  %v1093_v21 = vadd.f32 1.0, %v2493_v4  ;;  %v949_v7 = vadd.f32 %v3239_v45, %v3210_v31  ;;  %v951_v31 = vadd.f32 %v3239_v45, %v3214_v34 }
 0x1ca   : > { %v2497_v14 = vpop.eup %2496  ;;  %2512 = vpow2.f32 %v2165_v25  ;;  %v2166_v50 = vmul.f32 -1.442695, %v979_v12  ;;  %v1267_v11 = vmul.f32 %v2495_v39, %v3272_v58 }
 0x1cb   : > { %v2499_v20 = vpop.eup %2498  ;;  %2514 = vpow2.f32 %v2148_v19  ;;  %v986_v19 = vadd.f32 %v3233_v43, %v3202_v27  ;;  %v988_v27 = vadd.f32 %v3233_v43, %v3208_v30 }
 0x1cc   : > { %v2501_v48 = vpop.eup %2500  ;;  %2516 = vpow2.f32 %v2166_v50  ;;  %v3360_v0 = vpop.f32.mrb[52].mxu0  ;;  %v1268_v63 = vmul.f32 %v2499_v20, %v3280_v60  ;;  %v3364_v17 = vadd.f32 %v1267_v11, %v3269_v57  ;;  %v2151_v50 = vmul.f32 -1.442695, %v949_v7 }
 0x1cd   : > { %v3366_v3 = vpop.eup %2502  ;;  %2518 = vpow2.f32 %v2149_v2  ;;  %v1111_v47 = vadd.f32 1.0, %v2501_v48  ;;  %v3369_v58 = vsub.f32 %v1211_v6, %v3360_v0  ;;  %v729_v1 = vpop.f32.mrb[53].mxu0  ;;  %v1094_v6 = vadd.f32 1.0, %v2497_v14 }
 0x1ce   : > { %v2505_v18 = vpop.eup %2504  ;;  %2520 = vpow2.f32 %v2150_v24  ;;  %v981_v60 = vadd.f32 %v3239_v45, %v729_v1  ;;  %v3376_v57 = vpop.f32.mrb[54].mxu0  ;;  %v3379_v36 = vadd.f32 %v1268_v63, %v3277_v55  ;;  %v1213_v55 = vmax.f32 %v986_v19, 0.0 }
 0x1cf   : > { %2522 = vrcp.f32 %v1111_v47  ;;  %v1112_v48 = vadd.f32 1.0, %v2505_v18  ;;  %v3382_v4 = vsub.f32 %v1212_v22, %v3376_v57  ;;  %v733_v25 = vpop.f32.mrb[55].mxu0  ;;  %v1214_v30 = vmax.f32 %v988_v27, 0.0 }
 0x1d0   : > { %2524 = vrcp.f32 %v1092_v44  ;;  %v2167_v12 = vmul.f32 -1.442695, %v981_v60  ;;  %v983_v39 = vadd.f32 %v3239_v45, %v733_v25  ;;  %v2152_v63 = vmul.f32 -1.442695, %v951_v31 }
 0x1d1   : > { %v2507_v2 = vpop.eup %2506  ;;  %2526 = vrcp.f32 %v1112_v48  ;;  %v990_v18 = vadd.f32 %v3200_v26, %v3233_v43  ;;  %v992_v60 = vadd.f32 %v3204_v28, %v3233_v43 }
 0x1d2   : > { %v2509_v24 = vpop.eup %2508  ;;  %2528 = vpow2.f32 %v2167_v12  ;;  %v2168_v11 = vmul.f32 -1.442695, %v983_v39  ;;  %v1269_v20 = vmul.f32 %v2507_v2, %v3292_v62 }
 0x1d3   : > { %v2511_v22 = vpop.eup %2510  ;;  %2530 = vrcp.f32 %v1093_v21  ;;  %v1095_v27 = vadd.f32 1.0, %v2509_v24 }
 0x1d4   : > { %v2513_v44 = vpop.eup %2512  ;;  %2532 = vpow2.f32 %v2168_v11  ;;  %v3390_v34 = vpop.f32.mrb[56].mxu0  ;;  %v1270_v47 = vmul.f32 %v2511_v22, %v3302_v10  ;;  %v3394_v14 = vadd.f32 %v1269_v20, %v3287_v41 }
 0x1d5   : > { %v2515_v1 = vpop.eup %2514  ;;  %2534 = vrcp.f32 %v1094_v6  ;;  %v1113_v19 = vadd.f32 1.0, %v2513_v44  ;;  %v3399_v62 = vsub.f32 %v1213_v55, %v3390_v34  ;;  %v739_v21 = vpop.f32.mrb[57].mxu0  ;;  %v1216_v44 = vmax.f32 %v992_v60, 0.0 }
 0x1d6   : > { %v2517_v7 = vpop.eup %2516  ;;  %2536 = vpow2.f32 %v2151_v50  ;;  %v985_v10 = vadd.f32 %v3239_v45, %v739_v21  ;;  %v3404_v48 = vpop.f32.mrb[58].mxu0  ;;  %v3407_v41 = vadd.f32 %v1270_v47, %v3297_v33  ;;  %v1096_v55 = vadd.f32 1.0, %v2515_v1 }
 0x1d7   : > { %v2519_v25 = vpop.eup %2518  ;;  %2538 = vrcp.f32 %v1113_v19  ;;  %v1114_v26 = vadd.f32 1.0, %v2517_v7  ;;  %v3410_v31 = vsub.f32 %v1214_v30, %v3404_v48  ;;  %v743_v12 = vpop.f32.mrb[59].mxu0  ;;  %v1215_v50 = vmax.f32 %v990_v18, 0.0 }
 0x1d8   : > { %v2521_v39 = vpop.eup %2520  ;;  %2540 = vpow2.f32 %v2152_v63  ;;  %v2169_v2 = vmul.f32 -1.442695, %v985_v10  ;;  %v987_v28 = vadd.f32 %v3239_v45, %v743_v12  ;;  %v1097_v33 = vadd.f32 1.0, %v2519_v25 }
 0x1d9   : > { %v2523_v6 = vpop.eup %2522  ;;  %2542 = vrcp.f32 %v1114_v26  ;;  %v953_v30 = vadd.f32 %v3239_v45, %v3220_v37  ;;  %v1098_v47 = vadd.f32 1.0, %v2521_v39  ;;  %v957_v25 = vadd.f32 %v3239_v45, %v3241_v46 }
 0x1da   : > { %v3413_v11 = vpop.eup %2524  ;;  %2544 = vpow2.f32 %v2169_v2  ;;  %v2170_v24 = vmul.f32 -1.442695, %v987_v28  ;;  %v1271_v20 = vmul.f32 %v2523_v6, %v3310_v9  ;;  %v955_v9 = vadd.f32 %v3239_v45, %v3225_v40 }
 0x1db   : > { %v2527_v22 = vpop.eup %2526  ;;  %2546 = vrcp.f32 %v1095_v27  ;;  %v2153_v40 = vmul.f32 -1.442695, %v953_v30  ;;  %v959_v46 = vadd.f32 %v3239_v45, %v3246_v49 }
 0x1dc   : > { %v2529_v63 = vpop.eup %2528  ;;  %2548 = vpow2.f32 %v2170_v24  ;;  %v3418_v19 = vpop.f32.mrb[60].mxu0  ;;  %v1272_v1 = vmul.f32 %v2527_v22, %v3318_v54  ;;  %v3422_v18 = vadd.f32 %v1271_v20, %v3307_v32  ;;  %v2155_v24 = vmul.f32 -1.442695, %v957_v25 }
 0x1dd   : > { %v3424_v21 = vpop.eup %2530  ;;  %2550 = vrcp.f32 %v1096_v55  ;;  %v1115_v7 = vadd.f32 1.0, %v2529_v63  ;;  %v3429_v37 = vsub.f32 %v1215_v50, %v3418_v19  ;;  %v749_v60 = vpop.f32.mrb[61].mxu0  ;;  %v2156_v63 = vmul.f32 -1.442695, %v959_v46 }
 0x1de   : > { %v2533_v10 = vpop.eup %2532  ;;  %2552 = vrcp.f32 %v1097_v33  ;;  %v989_v54 = vadd.f32 %v3239_v45, %v749_v60  ;;  %v3434_v32 = vpop.f32.mrb[62].mxu0  ;;  %v3437_v27 = vadd.f32 %v1272_v1, %v3315_v52  ;;  %v2154_v52 = vmul.f32 -1.442695, %v955_v9 }
 0x1df   : > { %v3439_v26 = vpop.eup %2534  ;;  %2554 = vrcp.f32 %v1115_v7  ;;  %v1116_v12 = vadd.f32 1.0, %v2533_v10  ;;  %v3442_v39 = vsub.f32 %v1216_v44, %v3434_v32  ;;  %v753_v2 = vpop.f32.mrb[63].mxu0 }
 0x1e0   : > { %v2537_v28 = vpop.eup %2536  ;;  %2556 = vrcp.f32 %v1098_v47  ;;  %v2171_v6 = vmul.f32 -1.442695, %v989_v54  ;;  %v991_v55 = vadd.f32 %v3239_v45, %v753_v2 }
 0x1e1   : > { %v2539_v50 = vpop.eup %2538  ;;  %2558 = vrcp.f32 %v1116_v12  ;;  %v1099_v9 = vadd.f32 1.0, %v2537_v28 }
 0x1e2   : > { %v2541_v33 = vpop.eup %2540  ;;  %2560 = vpow2.f32 %v2171_v6  ;;  %v2172_v20 = vmul.f32 -1.442695, %v991_v55  ;;  %v1273_v22 = vmul.f32 %v2539_v50, %v3341_v42 }
 0x1e3   : > { %v2543_v30 = vpop.eup %2542  ;;  %2562 = vpow2.f32 %v2153_v40  ;;  %v1100_v25 = vadd.f32 1.0, %v2541_v33 }
 0x1e4   : > { %v2545_v44 = vpop.eup %2544  ;;  %2564 = vpow2.f32 %v2172_v20  ;;  %v2270_v47 = vpop.f32.mrb[64].mxu0  ;;  %v1274_v49 = vmul.f32 %v2543_v30, %v3356_v56  ;;  %v3450_v1 = vadd.f32 %v1273_v22, %v3328_v15 }
 0x1e5   : > { %v3452_v45 = vpop.eup %2546  ;;  %2566 = vpow2.f32 %v2154_v52  ;;  %v1117_v7 = vadd.f32 1.0, %v2545_v44  ;;  %v934_v60 = vadd.f32 %v2270_v47, %v3233_v43  ;;  %v790_v10 = vpop.f32.mrb[65].mxu0 }
 0x1e6   : > { %v2549_v42 = vpop.eup %2548  ;;  %2568 = vpow2.f32 %v2155_v24  ;;  %v930_v54 = vadd.f32 %v3233_v43, %v790_v10  ;;  %v2271_v40 = vpop.f32.mrb[66].mxu0  ;;  %v3457_v12 = vadd.f32 %v1274_v49, %v3346_v35 }
 0x1e7   : > { %v3459_v56 = vpop.eup %2550  ;;  %2570 = vrcp.f32 %v1117_v7  ;;  %v1118_v15 = vadd.f32 1.0, %v2549_v42  ;;  %v1187_v2 = vmax.f32 %v934_v60, 0.0  ;;  %v936_v28 = vadd.f32 %v2271_v40, %v3233_v43  ;;  %v793_v46 = vpop.f32.mrb[67].mxu0 }
 0x1e8   : > { %v3462_v6 = vpop.eup %2552  ;;  %2572 = vpow2.f32 %v2156_v63  ;;  %v1185_v55 = vmax.f32 %v930_v54, 0.0  ;;  %v932_v50 = vadd.f32 %v3233_v43, %v793_v46 }
 0x1e9   : > { %v2555_v52 = vpop.eup %2554  ;;  %2574 = vrcp.f32 %v1118_v15  ;;  %v1219_v33 = vsub.f32 %v1187_v2, %v3152_v59  ;;  %v1188_v35 = vmax.f32 %v936_v28, 0.0 }
 0x1ea   : > { %v3466_v24 = vpop.eup %2556  ;;  %2576 = vrcp.f32 %v1099_v9  ;;  %v1217_v20 = vsub.f32 %v1185_v55, %v3144_v51  ;;  %v1186_v22 = vmax.f32 %v932_v50, 0.0  ;;  %v1275_v30 = vmul.f32 %v2555_v52, %v3369_v58 }
 0x1eb   : > { %v2559_v44 = vpop.eup %2558  ;;  %2578 = vrcp.f32 %v1100_v25  ;;  %v1251_v63 = vmul.f32 %v3366_v3, %v1219_v33  ;;  %v1220_v47 = vsub.f32 %v1188_v35, %v3156_v61 }
 0x1ec   : > { %v2561_v49 = vpop.eup %2560  ;;  %v1249_v7 = vmul.f32 %v3334_v38, %v1217_v20  ;;  %v1218_v60 = vsub.f32 %v1186_v22, %v3148_v53  ;;  %v2274_v10 = vpop.f32.mrb[68].mxu0  ;;  %v1276_v42 = vmul.f32 %v2559_v44, %v3382_v4  ;;  %v3476_v9 = vadd.f32 %v1275_v30, %v3360_v0 }
 0x1ed   : > { %v2563_v54 = vpop.eup %2562  ;;  %v1119_v40 = vadd.f32 1.0, %v2561_v49  ;;  %v3479_v58 = vadd.f32 %v1251_v63, %v3152_v59  ;;  %v1252_v3 = vmul.f32 %v3413_v11, %v1220_v47  ;;  %v942_v25 = vadd.f32 %v2274_v10, %v3233_v43  ;;  %v806_v15 = vpop.f32.mrb[69].mxu0 }
 0x1ee   : > { %v2565_v2 = vpop.eup %2564  ;;  %v3484_v38 = vadd.f32 %v1249_v7, %v3144_v51  ;;  %v1250_v28 = vmul.f32 %v3351_v23, %v1218_v60  ;;  %v938_v4 = vadd.f32 %v3233_v43, %v806_v15  ;;  %v2275_v0 = vpop.f32.mrb[70].mxu0  ;;  %v3489_v46 = vadd.f32 %v1276_v42, %v3376_v57 }
 0x1ef   : > { %v2567_v55 = vpop.eup %2566  ;;  %2580 = vrcp.f32 %v1119_v40  ;;  %v1120_v59 = vadd.f32 1.0, %v2565_v2  ;;  %v3492_v11 = vadd.f32 %v1252_v3, %v3156_v61  ;;  %v1191_v50 = vmax.f32 %v942_v25, 0.0  ;;  %v809_v52 = vpop.f32.mrb[71].mxu0 }
 0x1f0   : > { %v2569_v33 = vpop.eup %2568  ;;  %v3495_v51 = vadd.f32 %v1250_v28, %v3148_v53  ;;  %v1189_v35 = vmax.f32 %v938_v4, 0.0  ;;  %v944_v23 = vadd.f32 %v2275_v0, %v3233_v43  ;;  %v940_v20 = vadd.f32 %v3233_v43, %v809_v52 }
 0x1f1   : > { %v2571_v22 = vpop.eup %2570  ;;  %v1101_v57 = vadd.f32 1.0, %v2563_v54  ;;  %2582 = vrcp.f32 %v1120_v59  ;;  %v1223_v30 = vsub.f32 %v1191_v50, %v3174_v13  ;;  %v1102_v7 = vadd.f32 1.0, %v2567_v55 }
 0x1f2   : > { %v2573_v44 = vpop.eup %2572  ;;  %v1313_v61 = vpack.c.bf16 %v3495_v51, %v3484_v38  ;;  %v1221_v63 = vsub.f32 %v1189_v35, %v3160_v5  ;;  %v1192_v47 = vmax.f32 %v944_v23, 0.0  ;;  %v1190_v49 = vmax.f32 %v940_v20, 0.0 }
 0x1f3   : > { %v2575_v53 = vpop.eup %2574  ;;  %v1103_v60 = vadd.f32 1.0, %v2569_v33  ;;  %v1255_v10 = vmul.f32 %v3452_v45, %v1223_v30  ;;  %v1277_v42 = vmul.f32 %v2571_v22, %v3399_v62  ;;  %v1104_v4 = vadd.f32 1.0, %v2573_v44 }
 0x1f4   : > { %v2577_v40 = vpop.eup %2576  ;;  %v1253_v54 = vmul.f32 %v3424_v21, %v1221_v63  ;;  %v1224_v3 = vsub.f32 %v1192_v47, %v3180_v16  ;;  %v1222_v25 = vsub.f32 %v1190_v49, %v3164_v8  ;;  %v2278_v15 = vpop.f32.mrb[72].mxu0  ;;  %1470 = vmatmul.mubr.bf16.vlgmr.msra.gmra.mrb[16].mxu1 %v1313_v61  ;;  %v1278_v2 = vmul.f32 %v2575_v53, %v3410_v31  ;;  %v3960_v61 = vld [vmem:[#allocation12_spill] sm:$0xff] }
 0x1f5   : > { %v2579_v28 = vpop.eup %2578  ;;  %v3510_v0 = vadd.f32 %v1255_v10, %v3174_v13  ;;  %v950_v45 = vadd.f32 %v2278_v15, %v3233_v43  ;;  %v822_v55 = vpop.f32.mrb[73].mxu0  ;;  %v3959_v62 = vmov 0   ;;  %v3515_v21 = vadd.f32 %v1277_v42, %v3390_v34 }
 0x1f6   : > { %1479 = vmatprep.mubr.bf16.mxu1 %v3959_v62  ;;  %v3518_v59 = vadd.f32 %v1253_v54, %v3160_v5  ;;  %v1256_v50 = vmul.f32 %v3459_v56, %v1224_v3  ;;  %v1254_v31 = vmul.f32 %v3439_v26, %v1222_v25  ;;  %v946_v52 = vadd.f32 %v3233_v43, %v822_v55  ;;  %v2279_v33 = vpop.f32.mrb[74].mxu0 }
 0x1f7   : > { %2584 = vrcp.f32 %v1103_v60  ;;  %v1195_v13 = vmax.f32 %v950_v45, 0.0  ;;  %v952_v35 = vadd.f32 %v2279_v33, %v3233_v43  ;;  %v825_v23 = vpop.f32.mrb[75].mxu0  ;;  %v3525_v20 = vadd.f32 %v1278_v2, %v3404_v48  ;;  %v3963_v33 = vld [vmem:[#allocation18_spill] sm:$0xff] }
 0x1f8   : > { %v3528_v34 = vadd.f32 %v1256_v50, %v3180_v16  ;;  %v3531_v5 = vadd.f32 %v1254_v31, %v3164_v8  ;;  %v1193_v56 = vmax.f32 %v946_v52, 0.0  ;;  %v948_v26 = vadd.f32 %v3233_v43, %v825_v23  ;;  %v3961_v8 = vld [vmem:[#allocation14_spill] sm:$0xff]  ;;  %v3964_v23 = vld [vmem:[#allocation16_spill] sm:$0xff] }
 0x1f9   : > { %v2581_v22 = vpop.eup %2580  ;;  %2586 = vrcp.f32 %v1101_v57  ;;  %v1227_v30 = vsub.f32 %v1195_v13, %v3206_v29  ;;  %v1196_v44 = vmax.f32 %v952_v35, 0.0  ;;  %v1314_v48 = vpack.c.bf16 %v3492_v11, %v3479_v58  ;;  %v3962_v57 = vld [vmem:[#allocation13_spill] sm:$0xff] }
 0x1fa   : > { %2588 = vrcp.f32 %v1104_v4  ;;  %v1225_v63 = vsub.f32 %v1193_v56, %v3960_v61  ;;  %v1194_v47 = vmax.f32 %v948_v26, 0.0  ;;  %v1279_v60 = vmul.f32 %v2581_v22, %v3429_v37 }
 0x1fb   : > { %v2583_v16 = vpop.eup %2582  ;;  %2590 = vrcp.f32 %v1102_v7  ;;  %v1259_v49 = vmul.f32 %v2577_v40, %v1227_v30  ;;  %v1228_v53 = vsub.f32 %v1196_v44, %v3961_v8  ;;  %v1315_v26 = vpack.c.bf16 %v3531_v5, %v3518_v59  ;;  %v3965_v44 = vld [vmem:[#allocation19_spill] sm:$0xff] }
 0x1fc   : > { %v1257_v10 = vmul.f32 %v3462_v6, %v1225_v63  ;;  %v1226_v42 = vsub.f32 %v1194_v47, %v3962_v57  ;;  %v2282_v54 = vpop.f32.mrb[76].mxu0  ;;  %1480 = vmatmul.mubr.bf16.gmra.mrb[20].mxu1 %v1314_v48  ;;  %v1280_v3 = vmul.f32 %v2583_v16, %v3442_v39  ;;  %v3549_v40 = vadd.f32 %v1279_v60, %v3418_v19  ;;  %v3966_v48 = vld [vmem:[#allocation17_spill] sm:$0xff] }
 0x1fd   : > { %v3544_v25 = vadd.f32 %v1259_v49, %v3206_v29  ;;  %v1260_v15 = vmul.f32 %v2579_v28, %v1228_v53  ;;  %v958_v2 = vadd.f32 %v2282_v54, %v3233_v43  ;;  %v838_v7 = vpop.f32.mrb[77].mxu0  ;;  %1489 = vmatprep.mubr.bf16.mxu1 %v3959_v62 }
 0x1fe   : > { %v3552_v37 = vadd.f32 %v1257_v10, %v3960_v61  ;;  %v1258_v6 = vmul.f32 %v3466_v24, %v1226_v42  ;;  %v954_v4 = vadd.f32 %v3233_v43, %v838_v7  ;;  %v2283_v39 = vpop.f32.mrb[78].mxu0  ;;  %v3557_v29 = vadd.f32 %v1280_v3, %v3434_v32  ;;  %v3967_v7 = vld [vmem:[#allocation20_spill] sm:$0xff] }
 0x1ff   : > { %v3560_v28 = vadd.f32 %v1260_v15, %v3961_v8  ;;  %v1199_v45 = vmax.f32 %v958_v2, 0.0  ;;  %v960_v55 = vadd.f32 %v2283_v39, %v3233_v43  ;;  %v841_v50 = vpop.f32.mrb[79].mxu0  ;;  %v1316_v42 = vpack.c.bf16 %v3528_v34, %v3510_v0 }
 0x200   : > { %v3564_v19 = vadd.f32 %v1258_v6, %v3962_v57  ;;  %v1197_v31 = vmax.f32 %v954_v4, 0.0  ;;  %v956_v52 = vadd.f32 %v3233_v43, %v841_v50  ;;  %v3968_v6 = vld [vmem:[#allocation21_spill] sm:$0xff]  ;;  %v1322_v39 = vpack.c.bf16 %v3379_v36, %v3364_v17 }
 0x201   : > { %v2585_v24 = vpop.eup %2584  ;;  %v1231_v13 = vsub.f32 %v1199_v45, %v3963_v33  ;;  %v1200_v35 = vmax.f32 %v960_v55, 0.0  ;;  %v1318_v3 = vpack.c.bf16 %v3560_v28, %v3544_v25  ;;  %v1321_v4 = vpack.c.bf16 %v3968_v6, %v3967_v7 }
 0x202   : > { %v1229_v32 = vsub.f32 %v1197_v31, %v3964_v23  ;;  %v1198_v56 = vmax.f32 %v956_v52, 0.0  ;;  %v1317_v54 = vpack.c.bf16 %v3564_v19, %v3552_v37  ;;  %v1323_v45 = vpack.c.bf16 %v3407_v41, %v3394_v14 }
 0x203   : > { %v2587_v22 = vpop.eup %2586  ;;  %v1263_v30 = vmul.f32 %v2585_v24, %v1231_v13  ;;  %v1232_v61 = vsub.f32 %v1200_v35, %v3965_v44  ;;  %v1324_v55 = vpack.c.bf16 %v3437_v27, %v3422_v18  ;;  %v1325_v50 = vpack.c.bf16 %v3457_v12, %v3450_v1  ;;  %v3969_v13 = vld [vmem:[#allocation15_spill] sm:$0xff] }
 0x204   : > { %v2589_v63 = vpop.eup %2588  ;;  %v1261_v47 = vmul.f32 %v2587_v22, %v1229_v32  ;;  %v1230_v16 = vsub.f32 %v1198_v56, %v3966_v48  ;;  %1490 = vmatmul.mubr.bf16.gmra.mrb[24].mxu1 %v1315_v26  ;;  %v1326_v31 = vpack.c.bf16 %v3489_v46, %v3476_v9  ;;  %v1327_v52 = vpack.c.bf16 %v3525_v20, %v3515_v21 }
 0x205   : > { %v2591_v43 = vpop.eup %2590  ;;  %v3574_v49 = vadd.f32 %v1263_v30, %v3963_v33  ;;  %v1264_v8 = vmul.f32 %v2589_v63, %v1232_v61  ;;  %1499 = vmatprep.mubr.bf16.mxu1 %v3959_v62  ;;  %v1328_v24 = vpack.c.bf16 %v3557_v29, %v3549_v40  ;;  %v1345_v33 = vld [vmem:[%s3918_s4] sm:$0x3]  ;;  %v3970_v35 = vsub.s32 0, %v3969_v13 }
 0x206   : > { %v3578_v53 = vadd.f32 %v1261_v47, %v3964_v23  ;;  %v1262_v60 = vmul.f32 %v2591_v43, %v1230_v16 }
 0x207   : > { %v3581_v10 = vadd.f32 %v1264_v8, %v3965_v44  ;;  %v3629_v23 = vrot.slane %v1345_v33, %v3970_v35 }
 0x208   : > { %v3584_v57 = vadd.f32 %v1262_v60, %v3966_v48 }
 0x209   : > { %v1320_v2 = vpack.c.bf16 %v3581_v10, %v3574_v49 }
 0x20a   : > { %v1319_v15 = vpack.c.bf16 %v3584_v57, %v3578_v53 }
 0x20c   : > { %1500 = vmatmul.mubr.bf16.gmra.mrb[28].mxu1 %v1316_v42 }
 0x20d   : > { %1509 = vmatprep.mubr.bf16.mxu1 %v3959_v62 }
 0x214   : > { %1510 = vmatmul.mubr.bf16.gmra.mrb[32].mxu1 %v1317_v54 }
 0x215   : > { %1519 = vmatprep.mubr.bf16.mxu1 %v3959_v62 }
 0x21c   : > { %1520 = vmatmul.mubr.bf16.gmra.mrb[36].mxu1 %v1318_v3  ;;  %v3971_v3 = vsub.s32 1, %v3969_v13 }
 0x21d   : > { %1529 = vmatprep.mubr.bf16.mxu1 %v3959_v62 }
 0x224   : > { %1530 = vmatmul.mubr.bf16.gmra.mrb[40].mxu1 %v1319_v15  ;;  %v3637_v15 = vrot.slane %v1345_v33, %v3971_v3 }
 0x225   : > { %1539 = vmatprep.mubr.bf16.mxu1 %v3959_v62 }
 0x22c   : > { %1540 = vmatmul.mubr.bf16.gmra.mrb[44].mxu1 %v1320_v2 }
 0x22d   : > { %1549 = vmatprep.mubr.bf16.mxu1 %v3959_v62 }
 0x234   : > { %1550 = vmatmul.mubr.bf16.gmra.mrb[48].mxu1 %v1321_v4 }
 0x235   : > { %1559 = vmatprep.mubr.bf16.mxu1 %v3959_v62 }
 0x23c   : > { %1560 = vmatmul.mubr.bf16.gmra.mrb[52].mxu1 %v1322_v39 }
 0x23d   : > { %1569 = vmatprep.mubr.bf16.mxu1 %v3959_v62 }
 0x244   : > { %1570 = vmatmul.mubr.bf16.gmra.mrb[56].mxu1 %v1323_v45 }
 0x245   : > { %1579 = vmatprep.mubr.bf16.mxu1 %v3959_v62 }
 0x24c   : > { %1580 = vmatmul.mubr.bf16.gmra.mrb[60].mxu1 %v1324_v55 }
 0x24d   : > { %1589 = vmatprep.mubr.bf16.mxu1 %v3959_v62 }
 0x254   : > { %1590 = vmatmul.mubr.bf16.gmra.mrb[64].mxu1 %v1325_v50 }
 0x255   : > { %1599 = vmatprep.mubr.bf16.mxu1 %v3959_v62 }
 0x25c   : > { %1600 = vmatmul.mubr.bf16.gmra.mrb[68].mxu1 %v1326_v31 }
 0x25d   : > { %1609 = vmatprep.mubr.bf16.mxu1 %v3959_v62 }
 0x264   : > { %1610 = vmatmul.mubr.bf16.gmra.mrb[72].mxu1 %v1327_v52 }
 0x265   : > { %1619 = vmatprep.mubr.bf16.mxu1 %v3959_v62 }
 0x26c   : > { %1620 = vmatmul.mubr.bf16.gmra.mrb[76].mxu1 %v1328_v24 }
 0x2c7   : > { %v1471_v32 = vpop.f32.mrb[16].mxu1 }
 0x2c8   : > { %v1472_v56 = vadd.f32 %v1471_v32, %v3629_v23  ;;  %v1473_v26 = vpop.f32.mrb[17].mxu1 }
 0x2c9   : > { %v1475_v22 = vpop.f32.mrb[18].mxu1  ;;  %v1474_v52 = vadd.f32 %v1473_v26, %v3637_v15 }
 0x2ca   : > { %v2189_v30 = vmul.f32 -1.442695, %v1472_v56  ;;  %v1476_v62 = vadd.f32 %v1475_v22, %v3629_v23  ;;  %v1477_v44 = vpop.f32.mrb[19].mxu1 }
 0x2cb   : > { %v1478_v33 = vadd.f32 %v1477_v44, %v3637_v15  ;;  %v1822_v22 = vmax.f32 %v1474_v52, 0.0 }
 0x2cc   : > { %2592 = vpow2.f32 %v2189_v30  ;;  %v2190_v61 = vmul.f32 -1.442695, %v1476_v62 }
 0x2cd   : > { %v1823_v30 = vmax.f32 %v1478_v33, 0.0 }
 0x2ce   : > { %2594 = vpow2.f32 %v2190_v61 }
 0x2cf   : > { %v1481_v63 = vpop.f32.mrb[20].mxu1 }
 0x2d0   : > { %v1482_v47 = vadd.f32 %v1481_v63, %v3629_v23  ;;  %v1483_v48 = vpop.f32.mrb[21].mxu1 }
 0x2d1   : > { %v1485_v16 = vpop.f32.mrb[22].mxu1  ;;  %v1484_v44 = vadd.f32 %v1483_v48, %v3637_v15 }
 0x2d2   : > { %v2191_v43 = vmul.f32 -1.442695, %v1482_v47  ;;  %v1486_v8 = vadd.f32 %v1485_v16, %v3629_v23  ;;  %v1487_v60 = vpop.f32.mrb[23].mxu1 }
 0x2d3   : > { %v1824_v48 = vmax.f32 %v1484_v44, 0.0 }
 0x2d4   : > { %2596 = vpow2.f32 %v2191_v43  ;;  %v2192_v42 = vmul.f32 -1.442695, %v1486_v8  ;;  %v1854_v8 = vsub.f32 %v1822_v22, %v3484_v38 }
 0x2d6   : > { %v2593_v54 = vpop.eup %2592  ;;  %2598 = vpow2.f32 %v2192_v42 }
 0x2d7   : > { %v1726_v2 = vadd.f32 1.0, %v2593_v54  ;;  %v1491_v4 = vpop.f32.mrb[24].mxu1 }
 0x2d8   : > { %v2595_v39 = vpop.eup %2594  ;;  %v1492_v45 = vadd.f32 %v1491_v4, %v3629_v23  ;;  %v1493_v55 = vpop.f32.mrb[25].mxu1  ;;  %v1855_v4 = vsub.f32 %v1823_v30, %v3495_v51 }
 0x2d9   : > { %2600 = vrcp.f32 %v1726_v2  ;;  %v1727_v50 = vadd.f32 1.0, %v2595_v39  ;;  %v1495_v31 = vpop.f32.mrb[26].mxu1 }
 0x2da   : > { %v2193_v24 = vmul.f32 -1.442695, %v1492_v45  ;;  %v1496_v35 = vadd.f32 %v1495_v31, %v3629_v23  ;;  %v1497_v32 = vpop.f32.mrb[27].mxu1  ;;  %v1488_v45 = vadd.f32 %v1487_v60, %v3637_v15 }
 0x2db   : > { %2602 = vrcp.f32 %v1727_v50 }
 0x2dc   : > { %2604 = vpow2.f32 %v2193_v24  ;;  %v2194_v13 = vmul.f32 -1.442695, %v1496_v35  ;;  %v1825_v60 = vmax.f32 %v1488_v45, 0.0 }
 0x2de   : > { %v2597_v56 = vpop.eup %2596  ;;  %2606 = vpow2.f32 %v2194_v13 }
 0x2df   : > { %v1728_v62 = vadd.f32 1.0, %v2597_v56  ;;  %v1501_v61 = vpop.f32.mrb[28].mxu1 }
 0x2e0   : > { %v2599_v63 = vpop.eup %2598  ;;  %v1502_v47 = vadd.f32 %v1501_v61, %v3629_v23  ;;  %v3644_v26 = vpop.f32.mrb[29].mxu1 }
 0x2e1   : > { %2608 = vrcp.f32 %v1728_v62  ;;  %v1729_v16 = vadd.f32 1.0, %v2599_v63  ;;  %v1505_v43 = vpop.f32.mrb[30].mxu1  ;;  %v1856_v63 = vsub.f32 %v1824_v48, %v3479_v58 }
 0x2e2   : > { %v2195_v42 = vmul.f32 -1.442695, %v1502_v47  ;;  %v1506_v54 = vadd.f32 %v1505_v43, %v3629_v23  ;;  %v3650_v3 = vpop.f32.mrb[31].mxu1  ;;  %v1494_v47 = vadd.f32 %v1493_v55, %v3637_v15 }
 0x2e3   : > { %v2601_v2 = vpop.eup %2600  ;;  %2610 = vrcp.f32 %v1729_v16 }
 0x2e4   : > { %v1886_v39 = vmul.f32 %v2601_v2, %v1854_v8  ;;  %2612 = vpow2.f32 %v2195_v42  ;;  %v2196_v50 = vmul.f32 -1.442695, %v1506_v54  ;;  %v1857_v54 = vsub.f32 %v1825_v60, %v3492_v11 }
 0x2e5   : > { %v2603_v31 = vpop.eup %2602 }
 0x2e6   : > { %v2605_v52 = vpop.eup %2604  ;;  %v1918_v24 = vadd.f32 %v1886_v39, %v3484_v38  ;;  %v1887_v35 = vmul.f32 %v2603_v31, %v1855_v4  ;;  %2614 = vpow2.f32 %v2196_v50  ;;  %v1826_v50 = vmax.f32 %v1494_v47, 0.0 }
 0x2e7   : > { %v1730_v33 = vadd.f32 1.0, %v2605_v52  ;;  %v1511_v13 = vpop.f32.mrb[32].mxu1  ;;  %v1508_v47 = vadd.f32 %v3650_v3, %v3637_v15 }
 0x2e8   : > { %v2607_v56 = vpop.eup %2606  ;;  %1950 = vst [vmem:[%s3655_s13] sm:$0xff] %v1918_v24  ;;  %v1919_v22 = vadd.f32 %v1887_v35, %v3495_v51  ;;  %v1512_v30 = vadd.f32 %v1511_v13, %v3629_v23  ;;  %v3660_v62 = vpop.f32.mrb[33].mxu1  ;;  %v1498_v51 = vadd.f32 %v1497_v32, %v3637_v15 }
 0x2e9   : > { %2616 = vrcp.f32 %v1730_v33  ;;  %v1731_v38 = vadd.f32 1.0, %v2607_v56  ;;  %v1515_v61 = vpop.f32.mrb[34].mxu1 }
 0x2ea   : > { %1951 = vst [vmem:[%s3655_s13 + $0x8] sm:$0xff] %v1919_v22  ;;  %v2197_v16 = vmul.f32 -1.442695, %v1512_v30  ;;  %v1516_v43 = vadd.f32 %v1515_v61, %v3629_v23  ;;  %v3666_v8 = vpop.f32.mrb[35].mxu1  ;;  %v1827_v31 = vmax.f32 %v1498_v51, 0.0  ;;  %v1504_v22 = vadd.f32 %v3644_v26, %v3637_v15 }
 0x2eb   : > { %v2609_v44 = vpop.eup %2608  ;;  %2618 = vrcp.f32 %v1731_v38 }
 0x2ec   : > { %v1888_v42 = vmul.f32 %v2609_v44, %v1856_v63  ;;  %2620 = vpow2.f32 %v2197_v16  ;;  %v2198_v2 = vmul.f32 -1.442695, %v1516_v43 }
 0x2ed   : > { %v2611_v4 = vpop.eup %2610 }
 0x2ee   : > { %v2613_v39 = vpop.eup %2612  ;;  %v1920_v55 = vadd.f32 %v1888_v42, %v3479_v58  ;;  %v1889_v45 = vmul.f32 %v2611_v4, %v1857_v54  ;;  %2622 = vpow2.f32 %v2198_v2  ;;  %v1858_v58 = vsub.f32 %v1826_v50, %v3518_v59 }
 0x2ef   : > { %v1732_v52 = vadd.f32 1.0, %v2613_v39  ;;  %v1521_v24 = vpop.f32.mrb[36].mxu1  ;;  %v1828_v42 = vmax.f32 %v1504_v22, 0.0 }
 0x2f0   : > { %v2615_v35 = vpop.eup %2614  ;;  %1952 = vst [vmem:[%s3655_s13 + $0x10] sm:$0xff] %v1920_v55  ;;  %v1921_v32 = vadd.f32 %v1889_v45, %v3492_v11  ;;  %v1522_v48 = vadd.f32 %v1521_v24, %v3629_v23  ;;  %v3674_v33 = vpop.f32.mrb[37].mxu1  ;;  %v1859_v11 = vsub.f32 %v1827_v31, %v3531_v5  ;;  %v1829_v55 = vmax.f32 %v1508_v47, 0.0 }
 0x2f1   : > { %2624 = vrcp.f32 %v1732_v52  ;;  %v1733_v13 = vadd.f32 1.0, %v2615_v35  ;;  %v1525_v56 = vpop.f32.mrb[38].mxu1  ;;  %v1514_v52 = vadd.f32 %v3660_v62, %v3637_v15 }
 0x2f2   : > { %1953 = vst [vmem:[%s3655_s13 + $0x18] sm:$0xff] %v1921_v32  ;;  %v2199_v60 = vmul.f32 -1.442695, %v1522_v48  ;;  %v1526_v30 = vadd.f32 %v1525_v56, %v3629_v23  ;;  %v3681_v38 = vpop.f32.mrb[39].mxu1  ;;  %v1518_v48 = vadd.f32 %v3666_v8, %v3637_v15  ;;  %v1861_v56 = vsub.f32 %v1829_v55, %v3528_v34 }
 0x2f3   : > { %v2617_v61 = vpop.eup %2616  ;;  %2626 = vrcp.f32 %v1733_v13 }
 0x2f4   : > { %v1890_v63 = vmul.f32 %v2617_v61, %v1858_v58  ;;  %2628 = vpow2.f32 %v2199_v60  ;;  %v2200_v16 = vmul.f32 -1.442695, %v1526_v30  ;;  %v1830_v61 = vmax.f32 %v1514_v52, 0.0 }
 0x2f5   : > { %v2619_v43 = vpop.eup %2618 }
 0x2f6   : > { %v2621_v44 = vpop.eup %2620  ;;  %v1922_v26 = vadd.f32 %v1890_v63, %v3518_v59  ;;  %v1891_v51 = vmul.f32 %v2619_v43, %v1859_v11  ;;  %2630 = vpow2.f32 %v2200_v16  ;;  %v1860_v59 = vsub.f32 %v1828_v42, %v3510_v0 }
 0x2f7   : > { %v1734_v54 = vadd.f32 1.0, %v2621_v44  ;;  %v1531_v2 = vpop.f32.mrb[40].mxu1  ;;  %v1831_v11 = vmax.f32 %v1518_v48, 0.0  ;;  %v1524_v42 = vadd.f32 %v3674_v33, %v3637_v15 }
 0x2f8   : > { %v2623_v4 = vpop.eup %2622  ;;  %1954 = vst [vmem:[%s3655_s13 + $0x20] sm:$0xff] %v1922_v26  ;;  %v1923_v39 = vadd.f32 %v1891_v51, %v3531_v5  ;;  %v1532_v45 = vadd.f32 %v1531_v2, %v3629_v23  ;;  %v3690_v3 = vpop.f32.mrb[41].mxu1 }
 0x2f9   : > { %2632 = vrcp.f32 %v1734_v54  ;;  %v1735_v50 = vadd.f32 1.0, %v2623_v4  ;;  %v1535_v31 = vpop.f32.mrb[42].mxu1 }
 0x2fa   : > { %1955 = vst [vmem:[%s3655_s13 + $0x28] sm:$0xff] %v1923_v39  ;;  %v2201_v24 = vmul.f32 -1.442695, %v1532_v45  ;;  %v1536_v35 = vadd.f32 %v1535_v31, %v3629_v23  ;;  %v3697_v32 = vpop.f32.mrb[43].mxu1  ;;  %v1528_v45 = vadd.f32 %v3681_v38, %v3637_v15 }
 0x2fb   : > { %v2625_v5 = vpop.eup %2624  ;;  %2634 = vrcp.f32 %v1735_v50 }
 0x2fc   : > { %v1892_v13 = vmul.f32 %v2625_v5, %v1860_v59  ;;  %2636 = vpow2.f32 %v2201_v24  ;;  %v2202_v58 = vmul.f32 -1.442695, %v1536_v35  ;;  %v1832_v24 = vmax.f32 %v1524_v42, 0.0 }
 0x2fd   : > { %v2627_v22 = vpop.eup %2626 }
 0x2fe   : > { %v2629_v60 = vpop.eup %2628  ;;  %v1924_v62 = vadd.f32 %v1892_v13, %v3510_v0  ;;  %v1893_v30 = vmul.f32 %v2627_v22, %v1861_v56  ;;  %2638 = vpow2.f32 %v2202_v58  ;;  %v1862_v0 = vsub.f32 %v1830_v61, %v3552_v37 }
 0x2ff   : > { %v1736_v63 = vadd.f32 1.0, %v2629_v60  ;;  %v1541_v47 = vpop.f32.mrb[44].mxu1  ;;  %v1833_v56 = vmax.f32 %v1528_v45, 0.0 }
 0x300   : > { %v2631_v16 = vpop.eup %2630  ;;  %1956 = vst [vmem:[%s3655_s13 + $0x30] sm:$0xff] %v1924_v62  ;;  %v1925_v8 = vadd.f32 %v1893_v30, %v3528_v34  ;;  %v1542_v43 = vadd.f32 %v1541_v47, %v3629_v23  ;;  %v3706_v44 = vpop.f32.mrb[45].mxu1  ;;  %v1863_v34 = vsub.f32 %v1831_v11, %v3564_v19  ;;  %v1534_v62 = vadd.f32 %v3690_v3, %v3637_v15 }
 0x301   : > { %2640 = vrcp.f32 %v1736_v63  ;;  %v1737_v26 = vadd.f32 1.0, %v2631_v16  ;;  %v1545_v51 = vpop.f32.mrb[46].mxu1  ;;  %v1538_v63 = vadd.f32 %v3697_v32, %v3637_v15  ;;  %v1865_v16 = vsub.f32 %v1833_v56, %v3560_v28 }
 0x302   : > { %1957 = vst [vmem:[%s3655_s13 + $0x38] sm:$0xff] %v1925_v8  ;;  %v2203_v54 = vmul.f32 -1.442695, %v1542_v43  ;;  %v1546_v2 = vadd.f32 %v1545_v51, %v3629_v23  ;;  %v3713_v4 = vpop.f32.mrb[47].mxu1 }
 0x303   : > { %v2633_v39 = vpop.eup %2632  ;;  %2642 = vrcp.f32 %v1737_v26  ;;  %v1835_v42 = vmax.f32 %v1538_v63, 0.0 }
 0x304   : > { %v1894_v55 = vmul.f32 %v2633_v39, %v1862_v0  ;;  %2644 = vpow2.f32 %v2203_v54  ;;  %v2204_v50 = vmul.f32 -1.442695, %v1546_v2  ;;  %v1834_v0 = vmax.f32 %v1534_v62, 0.0 }
 0x305   : > { %v2635_v31 = vpop.eup %2634 }
 0x306   : > { %v2637_v59 = vpop.eup %2636  ;;  %v1926_v33 = vadd.f32 %v1894_v55, %v3552_v37  ;;  %v1895_v52 = vmul.f32 %v2635_v31, %v1863_v34  ;;  %2646 = vpow2.f32 %v2204_v50  ;;  %v1864_v37 = vsub.f32 %v1832_v24, %v3544_v25 }
 0x307   : > { %v1738_v35 = vadd.f32 1.0, %v2637_v59  ;;  %v1551_v5 = vpop.f32.mrb[48].mxu1  ;;  %v1544_v31 = vadd.f32 %v3706_v44, %v3637_v15 }
 0x308   : > { %v2639_v48 = vpop.eup %2638  ;;  %1958 = vst [vmem:[%s3655_s13 + $0x40] sm:$0xff] %v1926_v33  ;;  %v1927_v13 = vadd.f32 %v1895_v52, %v3564_v19  ;;  %v1552_v58 = vadd.f32 %v1551_v5, %v3629_v23  ;;  %v3722_v38 = vpop.f32.mrb[49].mxu1  ;;  %v1548_v5 = vadd.f32 %v3713_v4, %v3637_v15 }
 0x309   : > { %2648 = vrcp.f32 %v1738_v35  ;;  %v1739_v22 = vadd.f32 1.0, %v2639_v48  ;;  %v1555_v60 = vpop.f32.mrb[50].mxu1 }
 0x30a   : > { %1959 = vst [vmem:[%s3655_s13 + $0x48] sm:$0xff] %v1927_v13  ;;  %v2205_v30 = vmul.f32 -1.442695, %v1552_v58  ;;  %v1556_v61 = vadd.f32 %v1555_v60, %v3629_v23  ;;  %v3729_v11 = vpop.f32.mrb[51].mxu1 }
 0x30b   : > { %v2641_v19 = vpop.eup %2640  ;;  %2650 = vrcp.f32 %v1739_v22  ;;  %v1836_v22 = vmax.f32 %v1544_v31, 0.0 }
 0x30c   : > { %v1896_v47 = vmul.f32 %v2641_v19, %v1864_v37  ;;  %2652 = vpow2.f32 %v2205_v30  ;;  %v2206_v8 = vmul.f32 -1.442695, %v1556_v61  ;;  %v1837_v61 = vmax.f32 %v1548_v5, 0.0 }
 0x30d   : > { %v2643_v43 = vpop.eup %2642 }
 0x30e   : > { %v2645_v26 = vpop.eup %2644  ;;  %v1928_v3 = vadd.f32 %v1896_v47, %v3544_v25  ;;  %v1897_v51 = vmul.f32 %v2643_v43, %v1865_v16  ;;  %2654 = vpow2.f32 %v2206_v8  ;;  %v1866_v25 = vsub.f32 %v1834_v0, %v3578_v53 }
 0x30f   : > { %v1740_v54 = vadd.f32 1.0, %v2645_v26  ;;  %v1561_v2 = vpop.f32.mrb[52].mxu1  ;;  %v1554_v16 = vadd.f32 %v3722_v38, %v3637_v15  ;;  %v1869_v0 = vsub.f32 %v1837_v61, %v3581_v10 }
 0x310   : > { %v2647_v39 = vpop.eup %2646  ;;  %1960 = vst [vmem:[%s3655_s13 + $0x50] sm:$0xff] %v1928_v3  ;;  %v1929_v32 = vadd.f32 %v1897_v51, %v3560_v28  ;;  %v1562_v34 = vadd.f32 %v1561_v2, %v3629_v23  ;;  %v3738_v55 = vpop.f32.mrb[53].mxu1  ;;  %v1867_v28 = vsub.f32 %v1835_v42, %v3584_v57  ;;  %v1558_v3 = vadd.f32 %v3729_v11, %v3637_v15 }
 0x311   : > { %2656 = vrcp.f32 %v1740_v54  ;;  %v1741_v45 = vadd.f32 1.0, %v2647_v39  ;;  %v1565_v50 = vpop.f32.mrb[54].mxu1 }
 0x312   : > { %1961 = vst [vmem:[%s3655_s13 + $0x58] sm:$0xff] %v1929_v32  ;;  %v2207_v59 = vmul.f32 -1.442695, %v1562_v34  ;;  %v1566_v33 = vadd.f32 %v1565_v50, %v3629_v23  ;;  %v3745_v52 = vpop.f32.mrb[55].mxu1  ;;  %v1838_v32 = vmax.f32 %v1554_v16, 0.0  ;;  %v1839_v34 = vmax.f32 %v1558_v3, 0.0 }
 0x313   : > { %v2649_v24 = vpop.eup %2648  ;;  %2658 = vrcp.f32 %v1741_v45 }
 0x314   : > { %v1898_v35 = vmul.f32 %v2649_v24, %v1866_v25  ;;  %2660 = vpow2.f32 %v2207_v59  ;;  %v2208_v48 = vmul.f32 -1.442695, %v1566_v33 }
 0x315   : > { %v2651_v13 = vpop.eup %2650 }
 0x316   : > { %v2653_v56 = vpop.eup %2652  ;;  %v1930_v44 = vadd.f32 %v1898_v35, %v3578_v53  ;;  %v1899_v58 = vmul.f32 %v2651_v13, %v1867_v28  ;;  %2662 = vpow2.f32 %v2208_v48  ;;  %v1868_v53 = vsub.f32 %v1836_v22, %v3574_v49 }
 0x317   : > { %v1742_v60 = vadd.f32 1.0, %v2653_v56  ;;  %v1571_v37 = vpop.f32.mrb[56].mxu1  ;;  %v1564_v28 = vadd.f32 %v3738_v55, %v3637_v15 }
 0x318   : > { %v2655_v62 = vpop.eup %2654  ;;  %1962 = vst [vmem:[%s3655_s13 + $0x60] sm:$0xff] %v1930_v44  ;;  %v1931_v30 = vadd.f32 %v1899_v58, %v3584_v57  ;;  %v1572_v19 = vadd.f32 %v1571_v37, %v3629_v23  ;;  %v3754_v4 = vpop.f32.mrb[57].mxu1  ;;  %v1568_v44 = vadd.f32 %v3745_v52, %v3637_v15 }
 0x319   : > { %2664 = vrcp.f32 %v1742_v60  ;;  %v1743_v63 = vadd.f32 1.0, %v2655_v62  ;;  %v1575_v47 = vpop.f32.mrb[58].mxu1  ;;  %v1840_v62 = vmax.f32 %v1564_v28, 0.0 }
 0x31a   : > { %1963 = vst [vmem:[%s3655_s13 + $0x68] sm:$0xff] %v1931_v30  ;;  %v2209_v8 = vmul.f32 -1.442695, %v1572_v19  ;;  %v1576_v43 = vadd.f32 %v1575_v47, %v3629_v23  ;;  %v3761_v26 = vpop.f32.mrb[59].mxu1  ;;  %v1841_v47 = vmax.f32 %v1568_v44, 0.0 }
 0x31b   : > { %v2657_v57 = vpop.eup %2656  ;;  %2666 = vrcp.f32 %v1743_v63 }
 0x31c   : > { %v1900_v51 = vmul.f32 %v2657_v57, %v1868_v53  ;;  %2668 = vpow2.f32 %v2209_v8  ;;  %v2210_v42 = vmul.f32 -1.442695, %v1576_v43  ;;  %v1574_v43 = vadd.f32 %v3754_v4, %v3637_v15 }
 0x31d   : > { %v2659_v54 = vpop.eup %2658 }
 0x31e   : > { %v2661_v2 = vpop.eup %2660  ;;  %v1932_v38 = vadd.f32 %v1900_v51, %v3574_v49  ;;  %v1901_v39 = vmul.f32 %v2659_v54, %v1869_v0  ;;  %2670 = vpow2.f32 %v2210_v42  ;;  %v1870_v49 = vsub.f32 %v1838_v32, %v3967_v7 }
 0x31f   : > { %v1744_v45 = vadd.f32 1.0, %v2661_v2  ;;  %v1581_v50 = vpop.f32.mrb[60].mxu1  ;;  %v1578_v0 = vadd.f32 %v3761_v26, %v3637_v15  ;;  %v1873_v54 = vsub.f32 %v1841_v47, %v3379_v36 }
 0x320   : > { %v2663_v25 = vpop.eup %2662  ;;  %1964 = vst [vmem:[%s3655_s13 + $0x70] sm:$0xff] %v1932_v38  ;;  %v1933_v11 = vadd.f32 %v1901_v39, %v3581_v10  ;;  %v1582_v31 = vadd.f32 %v1581_v50, %v3629_v23  ;;  %v3770_v59 = vpop.f32.mrb[61].mxu1  ;;  %v1871_v10 = vsub.f32 %v1839_v34, %v3968_v6  ;;  %v1842_v34 = vmax.f32 %v1574_v43, 0.0 }
 0x321   : > { %2672 = vrcp.f32 %v1744_v45  ;;  %v1745_v33 = vadd.f32 1.0, %v2663_v25  ;;  %v1585_v24 = vpop.f32.mrb[62].mxu1  ;;  %v1843_v45 = vmax.f32 %v1578_v0, 0.0  ;;  %v1584_v28 = vadd.f32 %v3770_v59, %v3637_v15 }
 0x322   : > { %1965 = vst [vmem:[%s3655_s13 + $0x78] sm:$0xff] %v1933_v11  ;;  %v2211_v35 = vmul.f32 -1.442695, %v1582_v31  ;;  %v1586_v5 = vadd.f32 %v1585_v24, %v3629_v23  ;;  %v3777_v48 = vpop.f32.mrb[63].mxu1 }
 0x323   : > { %v2665_v13 = vpop.eup %2664  ;;  %2674 = vrcp.f32 %v1745_v33  ;;  %v1588_v44 = vadd.f32 %v3777_v48, %v3637_v15 }
 0x324   : > { %v1902_v56 = vmul.f32 %v2665_v13, %v1870_v49  ;;  %2676 = vpow2.f32 %v2211_v35  ;;  %v2212_v58 = vmul.f32 -1.442695, %v1586_v5 }
 0x325   : > { %v2667_v22 = vpop.eup %2666 }
 0x326   : > { %v2669_v60 = vpop.eup %2668  ;;  %v1934_v55 = vadd.f32 %v1902_v56, %v3967_v7  ;;  %v1903_v37 = vmul.f32 %v2667_v22, %v1871_v10  ;;  %2678 = vpow2.f32 %v2212_v58  ;;  %v1872_v7 = vsub.f32 %v1840_v62, %v3364_v17 }
 0x327   : > { %v1746_v30 = vadd.f32 1.0, %v2669_v60  ;;  %v1591_v61 = vpop.f32.mrb[64].mxu1 }
 0x328   : > { %v2671_v19 = vpop.eup %2670  ;;  %1966 = vst [vmem:[%s3655_s13 + $0x80] sm:$0xff] %v1934_v55  ;;  %v1935_v63 = vadd.f32 %v1903_v37, %v3968_v6  ;;  %v1592_v53 = vadd.f32 %v1591_v61, %v3629_v23  ;;  %v3786_v52 = vpop.f32.mrb[65].mxu1  ;;  %v1844_v37 = vmax.f32 %v1584_v28, 0.0 }
 0x329   : > { %2680 = vrcp.f32 %v1746_v30  ;;  %v1747_v16 = vadd.f32 1.0, %v2671_v19  ;;  %v1595_v8 = vpop.f32.mrb[66].mxu1 }
 0x32a   : > { %1967 = vst [vmem:[%s3655_s13 + $0x88] sm:$0xff] %v1935_v63  ;;  %v2213_v57 = vmul.f32 -1.442695, %v1592_v53  ;;  %v1596_v3 = vadd.f32 %v1595_v8, %v3629_v23  ;;  %v3793_v51 = vpop.f32.mrb[67].mxu1  ;;  %v1845_v63 = vmax.f32 %v1588_v44, 0.0  ;;  %v1876_v8 = vsub.f32 %v1844_v37, %v3422_v18 }
 0x32b   : > { %v2673_v6 = vpop.eup %2672  ;;  %2682 = vrcp.f32 %v1747_v16 }
 0x32c   : > { %v1904_v42 = vmul.f32 %v2673_v6, %v1872_v7  ;;  %2684 = vpow2.f32 %v2213_v57  ;;  %v2214_v2 = vmul.f32 -1.442695, %v1596_v3  ;;  %v1877_v0 = vsub.f32 %v1845_v63, %v3437_v27 }
 0x32d   : > { %v2675_v38 = vpop.eup %2674 }
 0x32e   : > { %v2677_v39 = vpop.eup %2676  ;;  %v1936_v4 = vadd.f32 %v1904_v42, %v3364_v17  ;;  %v1905_v32 = vmul.f32 %v2675_v38, %v1873_v54  ;;  %2686 = vpow2.f32 %v2214_v2  ;;  %v1874_v17 = vsub.f32 %v1842_v34, %v3394_v14 }
 0x32f   : > { %v1748_v50 = vadd.f32 1.0, %v2677_v39  ;;  %v1601_v25 = vpop.f32.mrb[68].mxu1 }
 0x330   : > { %v2679_v11 = vpop.eup %2678  ;;  %1968 = vst [vmem:[%s3655_s13 + $0x90] sm:$0xff] %v1936_v4  ;;  %v1937_v26 = vadd.f32 %v1905_v32, %v3379_v36  ;;  %v1602_v31 = vadd.f32 %v1601_v25, %v3629_v23  ;;  %v3802_v33 = vpop.f32.mrb[69].mxu1  ;;  %v1875_v36 = vsub.f32 %v1843_v45, %v3407_v41 }
 0x331   : > { %2688 = vrcp.f32 %v1748_v50  ;;  %v1749_v24 = vadd.f32 1.0, %v2679_v11  ;;  %v1605_v49 = vpop.f32.mrb[70].mxu1 }
 0x332   : > { %1969 = vst [vmem:[%s3655_s13 + $0x98] sm:$0xff] %v1937_v26  ;;  %v2215_v35 = vmul.f32 -1.442695, %v1602_v31  ;;  %v1606_v5 = vadd.f32 %v1605_v49, %v3629_v23  ;;  %v3809_v13 = vpop.f32.mrb[71].mxu1 }
 0x333   : > { %v2681_v10 = vpop.eup %2680  ;;  %2690 = vrcp.f32 %v1749_v24 }
 0x334   : > { %v1906_v56 = vmul.f32 %v2681_v10, %v1874_v17  ;;  %2692 = vpow2.f32 %v2215_v35  ;;  %v2216_v58 = vmul.f32 -1.442695, %v1606_v5  ;;  %v1608_v5 = vadd.f32 %v3809_v13, %v3637_v15 }
 0x335   : > { %v2683_v22 = vpop.eup %2682 }
 0x336   : > { %v2685_v60 = vpop.eup %2684  ;;  %v1938_v59 = vadd.f32 %v1906_v56, %v3394_v14  ;;  %v1907_v55 = vmul.f32 %v2683_v22, %v1875_v36  ;;  %2694 = vpow2.f32 %v2216_v58  ;;  %v1594_v14 = vadd.f32 %v3786_v52, %v3637_v15 }
 0x337   : > { %v1750_v62 = vadd.f32 1.0, %v2685_v60  ;;  %v1611_v30 = vpop.f32.mrb[72].mxu1 }
 0x338   : > { %v2687_v61 = vpop.eup %2686  ;;  %1970 = vst [vmem:[%s3655_s13 + $0xa0] sm:$0xff] %v1938_v59  ;;  %v1939_v19 = vadd.f32 %v1907_v55, %v3407_v41  ;;  %v1612_v47 = vadd.f32 %v1611_v30, %v3629_v23  ;;  %v1613_v48 = vpop.f32.mrb[73].mxu1  ;;  %v1598_v41 = vadd.f32 %v3793_v51, %v3637_v15  ;;  %v1846_v39 = vmax.f32 %v1594_v14, 0.0 }
 0x339   : > { %2696 = vrcp.f32 %v1750_v62  ;;  %v1751_v53 = vadd.f32 1.0, %v2687_v61  ;;  %v1615_v16 = vpop.f32.mrb[74].mxu1  ;;  %v1849_v59 = vmax.f32 %v1608_v5, 0.0  ;;  %v1614_v37 = vadd.f32 %v1613_v48, %v3637_v15 }
 0x33a   : > { %1971 = vst [vmem:[%s3655_s13 + $0xa8] sm:$0xff] %v1939_v19  ;;  %v2217_v7 = vmul.f32 -1.442695, %v1612_v47  ;;  %v1616_v43 = vadd.f32 %v1615_v16, %v3629_v23  ;;  %v1617_v57 = vpop.f32.mrb[75].mxu1  ;;  %v1847_v4 = vmax.f32 %v1598_v41, 0.0  ;;  %v1878_v31 = vsub.f32 %v1846_v39, %v3450_v1 }
 0x33b   : > { %v2689_v3 = vpop.eup %2688  ;;  %2698 = vrcp.f32 %v1751_v53  ;;  %v1881_v30 = vsub.f32 %v1849_v59, %v3489_v46  ;;  %v1618_v61 = vadd.f32 %v1617_v57, %v3637_v15  ;;  %v1850_v53 = vmax.f32 %v1614_v37, 0.0 }
 0x33c   : > { %v1908_v6 = vmul.f32 %v2689_v3, %v1876_v8  ;;  %2700 = vpow2.f32 %v2217_v7  ;;  %v2218_v42 = vmul.f32 -1.442695, %v1616_v43 }
 0x33d   : > { %v2691_v54 = vpop.eup %2690  ;;  %v1851_v48 = vmax.f32 %v1618_v61, 0.0  ;;  %v1882_v43 = vsub.f32 %v1850_v53, %v3515_v21 }
 0x33e   : > { %v2693_v2 = vpop.eup %2692  ;;  %v1940_v52 = vadd.f32 %v1908_v6, %v3422_v18  ;;  %v1909_v38 = vmul.f32 %v2691_v54, %v1877_v0  ;;  %2702 = vpow2.f32 %v2218_v42  ;;  %v1604_v18 = vadd.f32 %v3802_v33, %v3637_v15 }
 0x33f   : > { %v1752_v32 = vadd.f32 1.0, %v2693_v2  ;;  %v1621_v34 = vpop.f32.mrb[76].mxu1  ;;  %v1883_v41 = vsub.f32 %v1851_v48, %v3525_v20 }
 0x340   : > { %v2695_v45 = vpop.eup %2694  ;;  %1972 = vst [vmem:[%s3655_s13 + $0xb0] sm:$0xff] %v1940_v52  ;;  %v1941_v51 = vadd.f32 %v1909_v38, %v3437_v27  ;;  %v1622_v50 = vadd.f32 %v1621_v34, %v3629_v23  ;;  %v1623_v25 = vpop.f32.mrb[77].mxu1  ;;  %v1879_v27 = vsub.f32 %v1847_v4, %v3457_v12  ;;  %v1848_v58 = vmax.f32 %v1604_v18, 0.0 }
 0x341   : > { %2704 = vrcp.f32 %v1752_v32  ;;  %v1753_v11 = vadd.f32 1.0, %v2695_v45  ;;  %v1625_v26 = vpop.f32.mrb[78].mxu1  ;;  %v1624_v57 = vadd.f32 %v1623_v25, %v3637_v15 }
 0x342   : > { %1973 = vst [vmem:[%s3655_s13 + $0xb8] sm:$0xff] %v1941_v51  ;;  %v2219_v24 = vmul.f32 -1.442695, %v1622_v50  ;;  %v1626_v49 = vadd.f32 %v1625_v26, %v3629_v23  ;;  %v1627_v17 = vpop.f32.mrb[79].mxu1  ;;  %v1880_v13 = vsub.f32 %v1848_v58, %v3476_v9 }
 0x343   : > { %v2697_v28 = vpop.eup %2696  ;;  %2706 = vrcp.f32 %v1753_v11  ;;  %v1628_v6 = vadd.f32 %v1627_v17, %v3637_v15  ;;  %v1852_v54 = vmax.f32 %v1624_v57, 0.0 }
 0x344   : > { %v1910_v35 = vmul.f32 %v2697_v28, %v1878_v31  ;;  %2708 = vpow2.f32 %v2219_v24  ;;  %v2220_v10 = vmul.f32 -1.442695, %v1626_v49 }
 0x345   : > { %v2699_v36 = vpop.eup %2698  ;;  %v1853_v52 = vmax.f32 %v1628_v6, 0.0  ;;  %v1884_v38 = vsub.f32 %v1852_v54, %v3549_v40 }
 0x346   : > { %v2701_v56 = vpop.eup %2700  ;;  %v1942_v33 = vadd.f32 %v1910_v35, %v3450_v1  ;;  %v1911_v44 = vmul.f32 %v2699_v36, %v1879_v27  ;;  %2710 = vpow2.f32 %v2220_v10 }
 0x347   : > { %v1754_v23 = vadd.f32 1.0, %v2701_v56  ;;  %v1885_v15 = vsub.f32 %v1853_v52, %v3557_v29 }
 0x348   : > { %v2703_v22 = vpop.eup %2702  ;;  %1974 = vst [vmem:[%s3655_s13 + $0xc0] sm:$0xff] %v1942_v33  ;;  %v1943_v60 = vadd.f32 %v1911_v44, %v3457_v12 }
 0x349   : > { %2712 = vrcp.f32 %v1754_v23  ;;  %v1755_v55 = vadd.f32 1.0, %v2703_v22 }
 0x34a   : > { %1975 = vst [vmem:[%s3655_s13 + $0xc8] sm:$0xff] %v1943_v60 }
 0x34b   : > { %v2705_v62 = vpop.eup %2704  ;;  %2714 = vrcp.f32 %v1755_v55 }
 0x34c   : > { %v1912_v1 = vmul.f32 %v2705_v62, %v1880_v13 }
 0x34d   : > { %v2707_v19 = vpop.eup %2706 }
 0x34e   : > { %v2709_v63 = vpop.eup %2708  ;;  %v1944_v12 = vadd.f32 %v1912_v1, %v3476_v9  ;;  %v1913_v47 = vmul.f32 %v2707_v19, %v1881_v30 }
 0x34f   : > { %v1756_v16 = vadd.f32 1.0, %v2709_v63 }
 0x350   : > { %v2711_v8 = vpop.eup %2710  ;;  %1976 = vst [vmem:[%s3655_s13 + $0xd0] sm:$0xff] %v1944_v12  ;;  %v1945_v14 = vadd.f32 %v1913_v47, %v3489_v46 }
 0x351   : > { %2716 = vrcp.f32 %v1756_v16  ;;  %v1757_v7 = vadd.f32 1.0, %v2711_v8 }
 0x352   : > { %1977 = vst [vmem:[%s3655_s13 + $0xd8] sm:$0xff] %v1945_v14 }
 0x353   : > { %v2713_v3 = vpop.eup %2712  ;;  %2718 = vrcp.f32 %v1757_v7 }
 0x354   : > { %v1914_v9 = vmul.f32 %v2713_v3, %v1882_v43 }
 0x355   : > { %v2715_v46 = vpop.eup %2714 }
 0x356   : > { %v1946_v0 = vadd.f32 %v1914_v9, %v3515_v21  ;;  %v1915_v42 = vmul.f32 %v2715_v46, %v1883_v41 }
 0x358   : > { %1978 = vst [vmem:[%s3655_s13 + $0xe0] sm:$0xff] %v1946_v0  ;;  %v1947_v2 = vadd.f32 %v1915_v42, %v3525_v20 }
 0x35a   : > { %1979 = vst [vmem:[%s3655_s13 + $0xe8] sm:$0xff] %v1947_v2 }
 0x35b   : > { %v2717_v39 = vpop.eup %2716 }
 0x35c   : > { %v1916_v4 = vmul.f32 %v2717_v39, %v1884_v38 }
 0x35d   : > { %v2719_v21 = vpop.eup %2718 }
 0x35e   : > { %v1948_v32 = vadd.f32 %v1916_v4, %v3549_v40  ;;  %v1917_v34 = vmul.f32 %v2719_v21, %v1885_v15 }
 0x360   : > { %1980 = vst [vmem:[%s3655_s13 + $0xf0] sm:$0xff] %v1948_v32  ;;  %v1949_v20 = vadd.f32 %v1917_v34, %v3557_v29 }
 0x362   : > { %1981 = vst [vmem:[%s3655_s13 + $0xf8] sm:$0xff] %v1949_v20 }
 0x363   : > { %2819 = shalt.err (!%p2816_p7)
}
 0x364   : > { %s2820_s24 = scalar_lea.hbm %s3866_s14, 4096  ;;  %s2824_s28 = scalar_lea.hbm %s3919_s5, 16384 }
 0x365   : > { %p2821_p9 = scmp.ne.s32.totalorder %s3866_s14, %s2820_s24  ;;  %p2825_p5 = scmp.lt.u32.totalorder %s3866_s14, %s3919_s5 }
 0x366   : > { %p2826_p10 = scmp.lt.u32.totalorder %s2824_s28, %s2820_s24  ;;  %p2828_p1 = scmp.lt.u32.totalorder %s2820_s24, %s3866_s14 }
 0x367   : > { %p2822_p12 = pnand %p2821_p9, %p3036_p6 }
 0x368   : > { %p2827_p11 = por %p2826_p10, %p2825_p5 }
 0x369   : > { %p2823_p0 = pneg %p2822_p12 }
 0x36a   : > { %p2829_p2 = por %p2828_p1, %p2827_p11 }
 0x36c   : > { %p2830_p4 = pnand %p2829_p2, %p2823_p0 }
 0x36e   : > { %2833 = shalt.err (!%p2830_p4)
}
 0x36f   : > { %s2889_s29 = smov 128   ;;  %s2890_s9 = smov 8  }
 0x370   : > { %2326 = dma.vmem_to_hbm [thread:$0]  (%p3036_p6), %s3868_s8, 4096, %s3866_s14, %s1983_s22, %s2889_s29, %s2889_s29, %s2890_s9  }
 0x371 PF: > { %p2348_p8 = scmp.ge.s32.totalorder %s2876_s21, 2  ;;  %s2011_s11 = sand.u32 1, %s2864_s18  }
 0x372   : > { %p3972_p13 = scmp.ne.s32.totalorder %s3939_s25, 0  ;;  %s2012_s15 = scalar_lea.sflag [#allocation4], %s2011_s11 }
 0x374   : > { %p2340_p3 = pnand %p2348_p8, %p3972_p13 }
 0x376   : > { %2859 = dma.done.wait (!%p2340_p3), %s2012_s15, 4096  }
 0x377   : > { %2861 = vsyncadd (!%p2340_p3), %s2012_s15, 4294963200  ;;  %p19_p7 = scmp.ge.s32.totalorder %s3023_s16, 6   ;;  %s3973_s18 = smov %s2868_s19 }
 0x378   : > { %s3974_s19 = smov %s2872_s20  ;;  %s3975_s20 = smov %s3032_s27 }
 0x379   : > { %s3976_s21 = smov %s3023_s16  ;;  %21 = sbr.rel (!%p19_p7) target bundleno = 6 (0x6), region = 93 }
 0x380   :  { %2017 = vsyncpa [#allocation3], 1 }
 0x381   :  { %2019 = vsyncpa [#allocation3 + $0x1], 1 }
 0x382   :  { %2020 = vsyncpa [#allocation6], 1 }
 0x383   :  { %2021 = vsyncpa [#allocation4], 1 }
 0x384   :  { %2023 = vsyncpa [#allocation4 + $0x1], 1 }

</bundles_post_ra>
